<compile_context>
chip_gen: v6e
topology: v6e:2x2x1
jax: 0.10.0
libtpu: 0.0.40
codegen_flags: <defaults>
</compile_context>

<pallas_src>
import math
import numpy as np
import jax
import jax.numpy as jnp
from jax.experimental import pallas as pl
from jax.experimental.pallas import tpu as pltpu

LN_EPS = 1e-5  # torch.nn.LayerNorm default

# ---------------- config (small, consistent with the module) ----------------
N_VOCAB = 16
PAD_SIZE = 8          # seq length
EMBED = 32            # == dim_model
DIM_MODEL = 32
NUM_HEAD = 4
D_K = DIM_MODEL // NUM_HEAD
HIDDEN = 64
NUM_ENCODER = 2
NUM_CLASSES = 4
BATCH = 2
N_TOK = BATCH * PAD_SIZE          # fused row count B*S = 16
SEQ_CLS = PAD_SIZE * NUM_CLASSES  # 32

# ----------------- packed constant/parameter slab layout --------------------
# One (SLAB_ROWS, 128) f32 slab; every piece starts at a row offset % 8 == 0
# and lane offset 0, so in-kernel extraction is an aligned sublane slice.
SLAB_WIDTH = 128
SLAB_LAYOUT = (
    ("embT",  DIM_MODEL,        N_VOCAB),    # embedding^T            (D, V)
    ("wqkvT", 3 * DIM_MODEL,    DIM_MODEL),  # [Wq*inv | Wk | Wv]^T   (3D, D)
    ("woT",   DIM_MODEL,        DIM_MODEL),  # Wo^T                   (D, D)
    ("w1T",   HIDDEN,           DIM_MODEL),  # W1^T                   (H, D)
    ("w2T",   DIM_MODEL,        HIDDEN),     # W2^T                   (D, H)
    ("wcatT", SEQ_CLS,          DIM_MODEL),  # final-FC re-layout     (S*C, D)
    ("fold",  SEQ_CLS,          128),        # class fold (0/1)       (S*C, 128)
    ("bfc",   8,                128),        # final bias, padded     (8, 128)
    ("onesD", 8,                DIM_MODEL),  # row0 = 1/D             (1 used)
    ("peT",   DIM_MODEL,        N_TOK),      # positional enc^T       (D, N)
    ("mask4", NUM_HEAD * N_TOK, N_TOK),      # additive batch mask    (4N, N)
    ("bqkvT", 3 * DIM_MODEL,    N_TOK),      # qkv bias, lane-bcast   (3D, N)
    ("boT",   DIM_MODEL,        N_TOK),
    ("g1T",   DIM_MODEL,        N_TOK),
    ("be1T",  DIM_MODEL,        N_TOK),
    ("b1T",   HIDDEN,           N_TOK),
    ("b2T",   DIM_MODEL,        N_TOK),
    ("g2T",   DIM_MODEL,        N_TOK),
    ("be2T",  DIM_MODEL,        N_TOK),
    ("selT",  SEQ_CLS,          N_TOK),      # 0/1 token-select       (S*C, N)
    ("bsum",  8,                N_TOK),      # 0/1 batch-sum          (8, N)
)
SLAB_OFF = {}
_row = 0
for _name, _rows, _cols in SLAB_LAYOUT:
    SLAB_OFF[_name] = (_row, _rows, _cols)
    _row += _rows
SLAB_ROWS = _row  # 816 (multiple of 8)


# ----------------------------- Pallas kernel --------------------------------
def fused_forward_kernel(tok_ref, slab_ref, o_ref):
    """Entire forward pass (embedding -> encoders -> classifier), one call.

    Activation layout: transposed, (D, B*S) with column n = b*S + s (b-major).
    """
    D, Hd, B, S = DIM_MODEL, HIDDEN, BATCH, PAD_SIZE
    V, C, NH, DK = N_VOCAB, NUM_CLASSES, NUM_HEAD, D_K
    N = B * S

    def piece(name, rows=None):
        r0, nr, nc = SLAB_OFF[name]
        if rows is not None:
            nr = rows
        return slab_ref[r0:r0 + nr, 0:nc]

    embT = piece("embT")        # (D, V)
    wqkvT = piece("wqkvT")      # (3D, D) rows: q(scaled) | k | v
    woT = piece("woT")          # (D, D)
    w1T = piece("w1T")          # (H, D)
    w2T = piece("w2T")          # (D, H)
    wcatT = piece("wcatT")      # (S*C, D)
    fold = piece("fold")        # (S*C, 128)
    bfc = piece("bfc")          # (8, 128)
    onesD = piece("onesD", rows=1)   # (1, D) filled with 1/D
    peT = piece("peT")          # (D, N)
    mask4 = piece("mask4")      # (NH*N, N) additive, 0 / -1e30
    bqkvT = piece("bqkvT")      # (3D, N)
    boT = piece("boT")          # (D, N)
    g1T, be1T = piece("g1T"), piece("be1T")
    b1T, b2T = piece("b1T"), piece("b2T")
    g2T, be2T = piece("g2T"), piece("be2T")
    selT = piece("selT")        # (S*C, N)
    bsum = piece("bsum")        # (8, N)

    # ---- embedding gather (one-hot matmul, transposed) + positional enc ----
    tok = tok_ref[...]                                        # (1, N) int32
    viota = jax.lax.broadcasted_iota(jnp.int32, (V, N), 0)
    onehot = jnp.where(viota == tok, 1.0, 0.0)                # (V, N) f32
    xT = jnp.dot(embT, onehot, preferred_element_type=jnp.float32) + peT  # (D, N)

    def layer_norm_t(yT, gT, bT):
        # mean / E[(x-mu)^2] over D as matmuls against a 1/D row (MXU, not XLU)
        mu = jnp.dot(onesD, yT, preferred_element_type=jnp.float32)        # (1, N)
        c = yT - mu
        var = jnp.dot(onesD, c * c, preferred_element_type=jnp.float32)    # (1, N)
        return c * jax.lax.rsqrt(var + LN_EPS) * gT + bT

    # All encoder layers are deepcopies of one module => shared weights.
    for _ in range(NUM_ENCODER):
        # fused Q|K|V projection in transposed layout: (3D, D) @ (D, N)
        qkvT = jnp.dot(wqkvT, xT, preferred_element_type=jnp.float32) + bqkvT  # (3D, N)

        # per-head scores, each head an aligned 8-row sublane group; stack the
        # four (N, N) blocks along sublanes -> one (NH*N, N) softmax.
        s_blocks = []
        for h in range(NH):
            qhT = qkvT[h * DK:(h + 1) * DK, :]                 # (DK, N)
            khT = qkvT[D + h * DK:D + (h + 1) * DK, :]         # (DK, N)
            s_blocks.append(jnp.dot(qhT.T, khT,
                                    preferred_element_type=jnp.float32))  # (N, N)
        s = jnp.concatenate(s_blocks, axis=0) + mask4          # (NH*N, N)
        m = jnp.max(s, axis=-1, keepdims=True)
        e = jnp.exp(s - m)
        p = e * pl.reciprocal(jnp.sum(e, axis=-1, keepdims=True), approx=True)

        # context, still transposed: ctxT_h[d, i] = sum_j V_h[j, d] * P_h[i, j]
        ctx_blocks = []
        for h in range(NH):
            vhT = qkvT[2 * D + h * DK:2 * D + (h + 1) * DK, :]  # (DK, N)
            ph = p[h * N:(h + 1) * N, :]                        # (N, N)
            ctx_blocks.append(jax.lax.dot_general(
                vhT, ph, (((1,), (1,)), ((), ())),
                preferred_element_type=jnp.float32))            # (DK, N)
        ctxT = jnp.concatenate(ctx_blocks, axis=0)               # (D, N)

        attnT = jnp.dot(woT, ctxT, preferred_element_type=jnp.float32) + boT
        yT = layer_norm_t(attnT + xT, g1T, be1T)

        hT = jnp.maximum(
            jnp.dot(w1T, yT, preferred_element_type=jnp.float32) + b1T, 0.0)
        ffT = jnp.dot(w2T, hT, preferred_element_type=jnp.float32) + b2T
        xT = layer_norm_t(ffT + yT, g2T, be2T)

    # ---- flatten + final Linear as constant-matrix matmuls (no shuffles) ----
    # out[b, c] = sum_{s,d} x[b*S+s, d] * Wfc[s*D+d, c]
    t = jnp.dot(wcatT, xT, preferred_element_type=jnp.float32)    # (S*C, N)
    g = t * selT                                                  # keep n == b*S + (sc//C)
    p8 = jax.lax.dot_general(bsum, g, (((1,), (1,)), ((), ())),
                             preferred_element_type=jnp.float32)  # (8, S*C)
    o_ref[...] = jnp.dot(p8, fold, preferred_element_type=jnp.float32) + bfc


# ------------------------------ packing --------------------------------------
def pack_params(p):
    """Pack all weights/constants into one 128-lane-wide f32 slab (host side)."""
    D, S, B, C, H = DIM_MODEL, PAD_SIZE, BATCH, NUM_CLASSES, HIDDEN
    N = B * S
    SC = S * C
    inv = 1.0 / math.sqrt(D_K)

    def col_bcast(row):  # (1, K) -> (K, N): bias replicated along lanes
        return jnp.tile(row.reshape(-1, 1), (1, N)).astype(jnp.float32)

    # fold 1/sqrt(d_k) into Wq / bq
    wqkv = jnp.concatenate([p["wq"] * inv, p["wk"], p["wv"]], axis=1)  # (D, 3D)
    bqkv = jnp.concatenate([p["bq"] * inv, p["bk"], p["bv"]], axis=1)  # (1, 3D)

    peT = jnp.tile(p["pe"], (B, 1)).T                                  # (D, N)
    bid = jnp.arange(N) // S
    mask = jnp.where(bid[:, None] == bid[None, :], 0.0, -1e30).astype(jnp.float32)
    mask4 = jnp.tile(mask, (NUM_HEAD, 1))                              # (4N, N)

    # final-FC constants: out = Bsum @ ((Wcat^T @ xT) * Sel)^T-free path
    wcatT = p["wfc"].reshape(S, D, C).transpose(0, 2, 1).reshape(SC, D)
    sidx = jnp.arange(SC) // C
    cidx = jnp.arange(SC) % C
    selT = (sidx[:, None] == (jnp.arange(N) % S)[None, :]).astype(jnp.float32)
    bsum = (jnp.arange(8)[:, None] == bid[None, :]).astype(jnp.float32)
    fold = jnp.zeros((SC, 128), jnp.float32).at[jnp.arange(SC), cidx].set(1.0)
    bfc = jnp.zeros((8, 128), jnp.float32).at[:, :C].set(
        jnp.broadcast_to(p["bfc"], (8, C)))
    onesD = jnp.zeros((8, D), jnp.float32).at[0, :].set(1.0 / D)

    pieces = {
        "embT":  p["emb"].T,
        "wqkvT": wqkv.T,
        "woT":   p["wo"].T,
        "w1T":   p["w1"].T,
        "w2T":   p["w2"].T,
        "wcatT": wcatT,
        "fold":  fold,
        "bfc":   bfc,
        "onesD": onesD,
        "peT":   peT,
        "mask4": mask4,
        "bqkvT": col_bcast(bqkv),
        "boT":   col_bcast(p["bo"]),
        "g1T":   col_bcast(p["g1"]),
        "be1T":  col_bcast(p["be1"]),
        "b1T":   col_bcast(p["b1"]),
        "b2T":   col_bcast(p["b2"]),
        "g2T":   col_bcast(p["g2"]),
        "be2T":  col_bcast(p["be2"]),
        "selT":  selT,
        "bsum":  bsum,
    }

    slab = np.zeros((SLAB_ROWS, SLAB_WIDTH), np.float32)
    for name, nr, nc in SLAB_LAYOUT:
        r0 = SLAB_OFF[name][0]
        arr = np.asarray(pieces[name], np.float32)
        assert arr.shape == (nr, nc), (name, arr.shape, (nr, nc))
        slab[r0:r0 + nr, 0:nc] = arr
    return jnp.asarray(slab)


# ------------------------------ wrappers --------------------------------------
@jax.jit
def model_forward(tokens, slab):
    B, S = tokens.shape
    # b-major flatten along lanes: column n = b*S + s.
    tok = tokens.reshape(1, B * S).astype(jnp.int32)
    vmem = pl.BlockSpec(memory_space=pltpu.MemorySpace.VMEM)
    out8 = pl.pallas_call(
        fused_forward_kernel,
        out_shape=jax.ShapeDtypeStruct((8, 128), jnp.float32),  # lane-dense store
        in_specs=[vmem, vmem],
        out_specs=vmem,
    )(tok, slab)
    return out8[:B, :NUM_CLASSES]


def make_positional_encoding(pad_size, embed):
    pe = np.array([[pos / 10000.0 ** (i // 2 * 2.0 / embed) for i in range(embed)]
                   for pos in range(pad_size)], dtype=np.float32)
    pe[:, 0::2] = np.sin(pe[:, 0::2])
    pe[:, 1::2] = np.cos(pe[:, 1::2])
    return jnp.asarray(pe)


# --------------------------- pure-JAX reference -------------------------------
def ref_forward(tokens, p):
    def ln(y, g, b):
        mu = y.mean(-1, keepdims=True)
        var = ((y - mu) ** 2).mean(-1, keepdims=True)
        return (y - mu) / jnp.sqrt(var + LN_EPS) * g + b

    out = p["emb"][tokens] + p["pe"][None]
    B, S, D = out.shape
    for _ in range(NUM_ENCODER):
        x = out
        q = x @ p["wq"] + p["bq"]
        k = x @ p["wk"] + p["bk"]
        v = x @ p["wv"] + p["bv"]
        qh = q.reshape(B, S, NUM_HEAD, D_K).transpose(0, 2, 1, 3)
        kh = k.reshape(B, S, NUM_HEAD, D_K).transpose(0, 2, 1, 3)
        vh = v.reshape(B, S, NUM_HEAD, D_K).transpose(0, 2, 1, 3)
        scores = jnp.einsum("bhqd,bhkd->bhqk", qh, kh) / math.sqrt(D_K)
        p_attn = jax.nn.softmax(scores, axis=-1)
        ctx = jnp.einsum("bhqk,bhkd->bhqd", p_attn, vh)
        ctx = ctx.transpose(0, 2, 1, 3).reshape(B, S, D)
        y = ln(ctx @ p["wo"] + p["bo"] + x, p["g1"], p["be1"])
        h = jax.nn.relu(y @ p["w1"] + p["b1"])
        out = ln(h @ p["w2"] + p["b2"] + y, p["g2"], p["be2"])
    flat = out.reshape(B, -1)
    return flat @ p["wfc"] + p["bfc"]


# ---------------------------------- main --------------------------------------
if __name__ == "__main__":
    key = jax.random.PRNGKey(0)
    ks = jax.random.split(key, 16)

    def init(k, shape, scale=0.05):
        return (jax.random.normal(k, shape) * scale).astype(jnp.float32)

    D, H, C, S = DIM_MODEL, HIDDEN, NUM_CLASSES, PAD_SIZE
    params = {
        "emb": init(ks[0], (N_VOCAB, EMBED)),
        "pe": make_positional_encoding(PAD_SIZE, EMBED),
        "wq": init(ks[1], (D, D)), "bq": init(ks[2], (1, D)),
        "wk": init(ks[3], (D, D)), "bk": init(ks[4], (1, D)),
        "wv": init(ks[5], (D, D)), "bv": init(ks[6], (1, D)),
        "wo": init(ks[7], (D, D)), "bo": init(ks[8], (1, D)),
        "g1": jnp.ones((1, D), jnp.float32), "be1": jnp.zeros((1, D), jnp.float32),
        "w1": init(ks[9], (D, H)), "b1": init(ks[10], (1, H)),
        "w2": init(ks[11], (H, D)), "b2": init(ks[12], (1, D)),
        "g2": jnp.ones((1, D), jnp.float32), "be2": jnp.zeros((1, D), jnp.float32),
        "wfc": init(ks[13], (S * D, C)), "bfc": init(ks[14], (1, C)),
    }

    # Model.forward takes x = (token_ids, seq_len) and uses x[0]; we pass tokens directly.
    tokens = jax.random.randint(ks[15], (BATCH, PAD_SIZE), 0, N_VOCAB, dtype=jnp.int32)

    slab = pack_params(params)
    out = jax.block_until_ready(model_forward(tokens, slab))
    ref = jax.block_until_ready(ref_forward(tokens, params))

    assert out.shape == (BATCH, NUM_CLASSES)
    # tolerance 1e-3: everything is exact f32 except the EUP approx reciprocal
    # used for the softmax normalization (per perf review).
    np.testing.assert_allclose(np.asarray(out), np.asarray(ref), rtol=1e-3, atol=1e-3)
    # TODO(synk): dropout is a no-op (p=0 / inference); attn_mask path is dead code in the source.
    print("KERNEL_OK")
</pallas_src>

<mosaic_0001>
module attributes {stable_mosaic.version = 11 : i64} {
  func.func @fused_forward_kernel(%arg0: memref<1x16xi32, #tpu.memory_space<vmem>>, %arg1: memref<824x128xf32, #tpu.memory_space<vmem>>, %arg2: memref<8x128xf32, #tpu.memory_space<vmem>>) attributes {dimension_semantics = [], scalar_prefetch = 0 : i64, scratch_operands = 0 : i64, tpu.core_type = #tpu.core_type<tc>} {
    %c0 = arith.constant 0 : index
    %c0_0 = arith.constant 0 : index
    %0 = vector.load %arg1[%c0, %c0_0] : memref<824x128xf32, #tpu.memory_space<vmem>>, vector<32x16xf32>
    %c32 = arith.constant 32 : index
    %c0_1 = arith.constant 0 : index
    %1 = vector.load %arg1[%c32, %c0_1] : memref<824x128xf32, #tpu.memory_space<vmem>>, vector<96x32xf32>
    %c128 = arith.constant 128 : index
    %c0_2 = arith.constant 0 : index
    %2 = vector.load %arg1[%c128, %c0_2] : memref<824x128xf32, #tpu.memory_space<vmem>>, vector<32x32xf32>
    %c160 = arith.constant 160 : index
    %c0_3 = arith.constant 0 : index
    %3 = vector.load %arg1[%c160, %c0_3] : memref<824x128xf32, #tpu.memory_space<vmem>>, vector<64x32xf32>
    %c224 = arith.constant 224 : index
    %c0_4 = arith.constant 0 : index
    %4 = vector.load %arg1[%c224, %c0_4] : memref<824x128xf32, #tpu.memory_space<vmem>>, vector<32x64xf32>
    %c256 = arith.constant 256 : index
    %c0_5 = arith.constant 0 : index
    %5 = vector.load %arg1[%c256, %c0_5] : memref<824x128xf32, #tpu.memory_space<vmem>>, vector<32x32xf32>
    %c288 = arith.constant 288 : index
    %c0_6 = arith.constant 0 : index
    %6 = vector.load %arg1[%c288, %c0_6] : memref<824x128xf32, #tpu.memory_space<vmem>>, vector<32x128xf32>
    %c320 = arith.constant 320 : index
    %c0_7 = arith.constant 0 : index
    %7 = vector.load %arg1[%c320, %c0_7] : memref<824x128xf32, #tpu.memory_space<vmem>>, vector<8x128xf32>
    %c328 = arith.constant 328 : index
    %c0_8 = arith.constant 0 : index
    %8 = vector.load %arg1[%c328, %c0_8] : memref<824x128xf32, #tpu.memory_space<vmem>>, vector<1x32xf32>
    %c336 = arith.constant 336 : index
    %c0_9 = arith.constant 0 : index
    %9 = vector.load %arg1[%c336, %c0_9] : memref<824x128xf32, #tpu.memory_space<vmem>>, vector<32x16xf32>
    %c368 = arith.constant 368 : index
    %c0_10 = arith.constant 0 : index
    %10 = vector.load %arg1[%c368, %c0_10] : memref<824x128xf32, #tpu.memory_space<vmem>>, vector<64x16xf32>
    %c432 = arith.constant 432 : index
    %c0_11 = arith.constant 0 : index
    %11 = vector.load %arg1[%c432, %c0_11] : memref<824x128xf32, #tpu.memory_space<vmem>>, vector<96x16xf32>
    %c528 = arith.constant 528 : index
    %c0_12 = arith.constant 0 : index
    %12 = vector.load %arg1[%c528, %c0_12] : memref<824x128xf32, #tpu.memory_space<vmem>>, vector<32x16xf32>
    %c560 = arith.constant 560 : index
    %c0_13 = arith.constant 0 : index
    %13 = vector.load %arg1[%c560, %c0_13] : memref<824x128xf32, #tpu.memory_space<vmem>>, vector<32x16xf32>
    %c592 = arith.constant 592 : index
    %c0_14 = arith.constant 0 : index
    %14 = vector.load %arg1[%c592, %c0_14] : memref<824x128xf32, #tpu.memory_space<vmem>>, vector<32x16xf32>
    %c624 = arith.constant 624 : index
    %c0_15 = arith.constant 0 : index
    %15 = vector.load %arg1[%c624, %c0_15] : memref<824x128xf32, #tpu.memory_space<vmem>>, vector<64x16xf32>
    %c688 = arith.constant 688 : index
    %c0_16 = arith.constant 0 : index
    %16 = vector.load %arg1[%c688, %c0_16] : memref<824x128xf32, #tpu.memory_space<vmem>>, vector<32x16xf32>
    %c720 = arith.constant 720 : index
    %c0_17 = arith.constant 0 : index
    %17 = vector.load %arg1[%c720, %c0_17] : memref<824x128xf32, #tpu.memory_space<vmem>>, vector<32x16xf32>
    %c752 = arith.constant 752 : index
    %c0_18 = arith.constant 0 : index
    %18 = vector.load %arg1[%c752, %c0_18] : memref<824x128xf32, #tpu.memory_space<vmem>>, vector<32x16xf32>
    %c784 = arith.constant 784 : index
    %c0_19 = arith.constant 0 : index
    %19 = vector.load %arg1[%c784, %c0_19] : memref<824x128xf32, #tpu.memory_space<vmem>>, vector<32x16xf32>
    %c816 = arith.constant 816 : index
    %c0_20 = arith.constant 0 : index
    %20 = vector.load %arg1[%c816, %c0_20] : memref<824x128xf32, #tpu.memory_space<vmem>>, vector<8x16xf32>
    %c0_21 = arith.constant 0 : index
    %c0_22 = arith.constant 0 : index
    %21 = vector.load %arg0[%c0_21, %c0_22] : memref<1x16xi32, #tpu.memory_space<vmem>>, vector<1x16xi32>
    %22 = tpu.iota {dimensions = array<i32: 0>} : vector<16x16xi32>
    %23 = vector.broadcast %21 : vector<1x16xi32> to vector<16x16xi32>
    %24 = arith.cmpi eq, %22, %23 : vector<16x16xi32>
    %cst = arith.constant 1.000000e+00 : f32
    %cst_23 = arith.constant 0.000000e+00 : f32
    %25 = vector.broadcast %cst : f32 to vector<16x16xf32>
    %26 = vector.broadcast %cst_23 : f32 to vector<16x16xf32>
    %27 = arith.select %24, %25, %26 : vector<16x16xi1>, vector<16x16xf32>
    %cst_24 = arith.constant dense<0.000000e+00> : vector<32x16xf32>
    %28 = tpu.matmul %0, %27, %cst_24 {dimension_numbers = #tpu.dot_dimension_numbers<[1], [0], [0], [1], [0, 0, 1, 1], [], []>} : vector<32x16xf32>, vector<16x16xf32>, vector<32x16xf32> -> vector<32x16xf32>
    %29 = arith.addf %28, %9 : vector<32x16xf32>
    %cst_25 = arith.constant dense<0.000000e+00> : vector<96x16xf32>
    %30 = tpu.matmul %1, %29, %cst_25 {dimension_numbers = #tpu.dot_dimension_numbers<[1], [0], [0], [1], [0, 0, 1, 1], [], []>} : vector<96x32xf32>, vector<32x16xf32>, vector<96x16xf32> -> vector<96x16xf32>
    %31 = arith.addf %30, %11 : vector<96x16xf32>
    %32 = vector.extract_strided_slice %31 {offsets = [0, 0], sizes = [8, 16], strides = [1, 1]} : vector<96x16xf32> to vector<8x16xf32>
    %33 = vector.extract_strided_slice %31 {offsets = [32, 0], sizes = [8, 16], strides = [1, 1]} : vector<96x16xf32> to vector<8x16xf32>
    %34 = tpu.transpose %32, [1, 0] : vector<8x16xf32> -> vector<16x8xf32>
    %cst_26 = arith.constant dense<0.000000e+00> : vector<16x16xf32>
    %35 = tpu.matmul %34, %33, %cst_26 {dimension_numbers = #tpu.dot_dimension_numbers<[1], [0], [0], [1], [0, 0, 1, 1], [], []>} : vector<16x8xf32>, vector<8x16xf32>, vector<16x16xf32> -> vector<16x16xf32>
    %36 = vector.extract_strided_slice %31 {offsets = [8, 0], sizes = [8, 16], strides = [1, 1]} : vector<96x16xf32> to vector<8x16xf32>
    %37 = vector.extract_strided_slice %31 {offsets = [40, 0], sizes = [8, 16], strides = [1, 1]} : vector<96x16xf32> to vector<8x16xf32>
    %38 = tpu.transpose %36, [1, 0] : vector<8x16xf32> -> vector<16x8xf32>
    %cst_27 = arith.constant dense<0.000000e+00> : vector<16x16xf32>
    %39 = tpu.matmul %38, %37, %cst_27 {dimension_numbers = #tpu.dot_dimension_numbers<[1], [0], [0], [1], [0, 0, 1, 1], [], []>} : vector<16x8xf32>, vector<8x16xf32>, vector<16x16xf32> -> vector<16x16xf32>
    %40 = vector.extract_strided_slice %31 {offsets = [16, 0], sizes = [8, 16], strides = [1, 1]} : vector<96x16xf32> to vector<8x16xf32>
    %41 = vector.extract_strided_slice %31 {offsets = [48, 0], sizes = [8, 16], strides = [1, 1]} : vector<96x16xf32> to vector<8x16xf32>
    %42 = tpu.transpose %40, [1, 0] : vector<8x16xf32> -> vector<16x8xf32>
    %cst_28 = arith.constant dense<0.000000e+00> : vector<16x16xf32>
    %43 = tpu.matmul %42, %41, %cst_28 {dimension_numbers = #tpu.dot_dimension_numbers<[1], [0], [0], [1], [0, 0, 1, 1], [], []>} : vector<16x8xf32>, vector<8x16xf32>, vector<16x16xf32> -> vector<16x16xf32>
    %44 = vector.extract_strided_slice %31 {offsets = [24, 0], sizes = [8, 16], strides = [1, 1]} : vector<96x16xf32> to vector<8x16xf32>
    %45 = vector.extract_strided_slice %31 {offsets = [56, 0], sizes = [8, 16], strides = [1, 1]} : vector<96x16xf32> to vector<8x16xf32>
    %46 = tpu.transpose %44, [1, 0] : vector<8x16xf32> -> vector<16x8xf32>
    %cst_29 = arith.constant dense<0.000000e+00> : vector<16x16xf32>
    %47 = tpu.matmul %46, %45, %cst_29 {dimension_numbers = #tpu.dot_dimension_numbers<[1], [0], [0], [1], [0, 0, 1, 1], [], []>} : vector<16x8xf32>, vector<8x16xf32>, vector<16x16xf32> -> vector<16x16xf32>
    %48 = tpu.concatenate %35, %39, %43, %47 in 0 : vector<16x16xf32>, vector<16x16xf32>, vector<16x16xf32>, vector<16x16xf32> -> vector<64x16xf32>
    %49 = arith.addf %48, %10 : vector<64x16xf32>
    %cst_30 = arith.constant dense<0xFF800000> : vector<64xf32>
    %50 = vector.multi_reduction <maximumf>, %49, %cst_30 [1] : vector<64x16xf32> to vector<64xf32>
    %51 = vector.shape_cast %50 : vector<64xf32> to vector<64x1xf32>
    %52 = vector.broadcast %51 : vector<64x1xf32> to vector<64x16xf32>
    %53 = arith.subf %49, %52 : vector<64x16xf32>
    %54 = math.exp %53 : vector<64x16xf32>
    %cst_31 = arith.constant dense<0.000000e+00> : vector<64xf32>
    %55 = vector.multi_reduction <add>, %54, %cst_31 [1] : vector<64x16xf32> to vector<64xf32>
    %56 = vector.shape_cast %55 : vector<64xf32> to vector<64x1xf32>
    %57 = tpu.reciprocal %56 {approx = true} : vector<64x1xf32> -> vector<64x1xf32>
    %58 = vector.broadcast %57 : vector<64x1xf32> to vector<64x16xf32>
    %59 = arith.mulf %54, %58 : vector<64x16xf32>
    %60 = vector.extract_strided_slice %31 {offsets = [64, 0], sizes = [8, 16], strides = [1, 1]} : vector<96x16xf32> to vector<8x16xf32>
    %61 = vector.extract_strided_slice %59 {offsets = [0, 0], sizes = [16, 16], strides = [1, 1]} : vector<64x16xf32> to vector<16x16xf32>
    %cst_32 = arith.constant dense<0.000000e+00> : vector<8x16xf32>
    %62 = tpu.matmul %60, %61, %cst_32 {dimension_numbers = #tpu.dot_dimension_numbers<[1], [1], [0], [0], [0, 0, 1, 0], [], []>} : vector<8x16xf32>, vector<16x16xf32>, vector<8x16xf32> -> vector<8x16xf32>
    %63 = vector.extract_strided_slice %31 {offsets = [72, 0], sizes = [8, 16], strides = [1, 1]} : vector<96x16xf32> to vector<8x16xf32>
    %64 = vector.extract_strided_slice %59 {offsets = [16, 0], sizes = [16, 16], strides = [1, 1]} : vector<64x16xf32> to vector<16x16xf32>
    %cst_33 = arith.constant dense<0.000000e+00> : vector<8x16xf32>
    %65 = tpu.matmul %63, %64, %cst_33 {dimension_numbers = #tpu.dot_dimension_numbers<[1], [1], [0], [0], [0, 0, 1, 0], [], []>} : vector<8x16xf32>, vector<16x16xf32>, vector<8x16xf32> -> vector<8x16xf32>
    %66 = vector.extract_strided_slice %31 {offsets = [80, 0], sizes = [8, 16], strides = [1, 1]} : vector<96x16xf32> to vector<8x16xf32>
    %67 = vector.extract_strided_slice %59 {offsets = [32, 0], sizes = [16, 16], strides = [1, 1]} : vector<64x16xf32> to vector<16x16xf32>
    %cst_34 = arith.constant dense<0.000000e+00> : vector<8x16xf32>
    %68 = tpu.matmul %66, %67, %cst_34 {dimension_numbers = #tpu.dot_dimension_numbers<[1], [1], [0], [0], [0, 0, 1, 0], [], []>} : vector<8x16xf32>, vector<16x16xf32>, vector<8x16xf32> -> vector<8x16xf32>
    %69 = vector.extract_strided_slice %31 {offsets = [88, 0], sizes = [8, 16], strides = [1, 1]} : vector<96x16xf32> to vector<8x16xf32>
    %70 = vector.extract_strided_slice %59 {offsets = [48, 0], sizes = [16, 16], strides = [1, 1]} : vector<64x16xf32> to vector<16x16xf32>
    %cst_35 = arith.constant dense<0.000000e+00> : vector<8x16xf32>
    %71 = tpu.matmul %69, %70, %cst_35 {dimension_numbers = #tpu.dot_dimension_numbers<[1], [1], [0], [0], [0, 0, 1, 0], [], []>} : vector<8x16xf32>, vector<16x16xf32>, vector<8x16xf32> -> vector<8x16xf32>
    %72 = tpu.concatenate %62, %65, %68, %71 in 0 : vector<8x16xf32>, vector<8x16xf32>, vector<8x16xf32>, vector<8x16xf32> -> vector<32x16xf32>
    %cst_36 = arith.constant dense<0.000000e+00> : vector<32x16xf32>
    %73 = tpu.matmul %2, %72, %cst_36 {dimension_numbers = #tpu.dot_dimension_numbers<[1], [0], [0], [1], [0, 0, 1, 1], [], []>} : vector<32x32xf32>, vector<32x16xf32>, vector<32x16xf32> -> vector<32x16xf32>
    %74 = arith.addf %73, %12 : vector<32x16xf32>
    %75 = arith.addf %74, %29 : vector<32x16xf32>
    %cst_37 = arith.constant dense<0.000000e+00> : vector<1x16xf32>
    %76 = tpu.matmul %8, %75, %cst_37 {dimension_numbers = #tpu.dot_dimension_numbers<[1], [0], [0], [1], [0, 0, 1, 1], [], []>} : vector<1x32xf32>, vector<32x16xf32>, vector<1x16xf32> -> vector<1x16xf32>
    %77 = vector.broadcast %76 : vector<1x16xf32> to vector<32x16xf32>
    %78 = arith.subf %75, %77 : vector<32x16xf32>
    %79 = arith.mulf %78, %78 : vector<32x16xf32>
    %cst_38 = arith.constant dense<0.000000e+00> : vector<1x16xf32>
    %80 = tpu.matmul %8, %79, %cst_38 {dimension_numbers = #tpu.dot_dimension_numbers<[1], [0], [0], [1], [0, 0, 1, 1], [], []>} : vector<1x32xf32>, vector<32x16xf32>, vector<1x16xf32> -> vector<1x16xf32>
    %cst_39 = arith.constant 9.99999974E-6 : f32
    %81 = vector.broadcast %cst_39 : f32 to vector<1x16xf32>
    %82 = arith.addf %80, %81 : vector<1x16xf32>
    %83 = math.rsqrt %82 : vector<1x16xf32>
    %84 = vector.broadcast %83 : vector<1x16xf32> to vector<32x16xf32>
    %85 = arith.mulf %78, %84 : vector<32x16xf32>
    %86 = arith.mulf %85, %13 : vector<32x16xf32>
    %87 = arith.addf %86, %14 : vector<32x16xf32>
    %cst_40 = arith.constant dense<0.000000e+00> : vector<64x16xf32>
    %88 = tpu.matmul %3, %87, %cst_40 {dimension_numbers = #tpu.dot_dimension_numbers<[1], [0], [0], [1], [0, 0, 1, 1], [], []>} : vector<64x32xf32>, vector<32x16xf32>, vector<64x16xf32> -> vector<64x16xf32>
    %89 = arith.addf %88, %15 : vector<64x16xf32>
    %cst_41 = arith.constant 0.000000e+00 : f32
    %90 = vector.broadcast %cst_41 : f32 to vector<64x16xf32>
    %91 = arith.maximumf %89, %90 : vector<64x16xf32>
    %cst_42 = arith.constant dense<0.000000e+00> : vector<32x16xf32>
    %92 = tpu.matmul %4, %91, %cst_42 {dimension_numbers = #tpu.dot_dimension_numbers<[1], [0], [0], [1], [0, 0, 1, 1], [], []>} : vector<32x64xf32>, vector<64x16xf32>, vector<32x16xf32> -> vector<32x16xf32>
    %93 = arith.addf %92, %16 : vector<32x16xf32>
    %94 = arith.addf %93, %87 : vector<32x16xf32>
    %cst_43 = arith.constant dense<0.000000e+00> : vector<1x16xf32>
    %95 = tpu.matmul %8, %94, %cst_43 {dimension_numbers = #tpu.dot_dimension_numbers<[1], [0], [0], [1], [0, 0, 1, 1], [], []>} : vector<1x32xf32>, vector<32x16xf32>, vector<1x16xf32> -> vector<1x16xf32>
    %96 = vector.broadcast %95 : vector<1x16xf32> to vector<32x16xf32>
    %97 = arith.subf %94, %96 : vector<32x16xf32>
    %98 = arith.mulf %97, %97 : vector<32x16xf32>
    %cst_44 = arith.constant dense<0.000000e+00> : vector<1x16xf32>
    %99 = tpu.matmul %8, %98, %cst_44 {dimension_numbers = #tpu.dot_dimension_numbers<[1], [0], [0], [1], [0, 0, 1, 1], [], []>} : vector<1x32xf32>, vector<32x16xf32>, vector<1x16xf32> -> vector<1x16xf32>
    %cst_45 = arith.constant 9.99999974E-6 : f32
    %100 = vector.broadcast %cst_45 : f32 to vector<1x16xf32>
    %101 = arith.addf %99, %100 : vector<1x16xf32>
    %102 = math.rsqrt %101 : vector<1x16xf32>
    %103 = vector.broadcast %102 : vector<1x16xf32> to vector<32x16xf32>
    %104 = arith.mulf %97, %103 : vector<32x16xf32>
    %105 = arith.mulf %104, %17 : vector<32x16xf32>
    %106 = arith.addf %105, %18 : vector<32x16xf32>
    %cst_46 = arith.constant dense<0.000000e+00> : vector<96x16xf32>
    %107 = tpu.matmul %1, %106, %cst_46 {dimension_numbers = #tpu.dot_dimension_numbers<[1], [0], [0], [1], [0, 0, 1, 1], [], []>} : vector<96x32xf32>, vector<32x16xf32>, vector<96x16xf32> -> vector<96x16xf32>
    %108 = arith.addf %107, %11 : vector<96x16xf32>
    %109 = vector.extract_strided_slice %108 {offsets = [0, 0], sizes = [8, 16], strides = [1, 1]} : vector<96x16xf32> to vector<8x16xf32>
    %110 = vector.extract_strided_slice %108 {offsets = [32, 0], sizes = [8, 16], strides = [1, 1]} : vector<96x16xf32> to vector<8x16xf32>
    %111 = tpu.transpose %109, [1, 0] : vector<8x16xf32> -> vector<16x8xf32>
    %cst_47 = arith.constant dense<0.000000e+00> : vector<16x16xf32>
    %112 = tpu.matmul %111, %110, %cst_47 {dimension_numbers = #tpu.dot_dimension_numbers<[1], [0], [0], [1], [0, 0, 1, 1], [], []>} : vector<16x8xf32>, vector<8x16xf32>, vector<16x16xf32> -> vector<16x16xf32>
    %113 = vector.extract_strided_slice %108 {offsets = [8, 0], sizes = [8, 16], strides = [1, 1]} : vector<96x16xf32> to vector<8x16xf32>
    %114 = vector.extract_strided_slice %108 {offsets = [40, 0], sizes = [8, 16], strides = [1, 1]} : vector<96x16xf32> to vector<8x16xf32>
    %115 = tpu.transpose %113, [1, 0] : vector<8x16xf32> -> vector<16x8xf32>
    %cst_48 = arith.constant dense<0.000000e+00> : vector<16x16xf32>
    %116 = tpu.matmul %115, %114, %cst_48 {dimension_numbers = #tpu.dot_dimension_numbers<[1], [0], [0], [1], [0, 0, 1, 1], [], []>} : vector<16x8xf32>, vector<8x16xf32>, vector<16x16xf32> -> vector<16x16xf32>
    %117 = vector.extract_strided_slice %108 {offsets = [16, 0], sizes = [8, 16], strides = [1, 1]} : vector<96x16xf32> to vector<8x16xf32>
    %118 = vector.extract_strided_slice %108 {offsets = [48, 0], sizes = [8, 16], strides = [1, 1]} : vector<96x16xf32> to vector<8x16xf32>
    %119 = tpu.transpose %117, [1, 0] : vector<8x16xf32> -> vector<16x8xf32>
    %cst_49 = arith.constant dense<0.000000e+00> : vector<16x16xf32>
    %120 = tpu.matmul %119, %118, %cst_49 {dimension_numbers = #tpu.dot_dimension_numbers<[1], [0], [0], [1], [0, 0, 1, 1], [], []>} : vector<16x8xf32>, vector<8x16xf32>, vector<16x16xf32> -> vector<16x16xf32>
    %121 = vector.extract_strided_slice %108 {offsets = [24, 0], sizes = [8, 16], strides = [1, 1]} : vector<96x16xf32> to vector<8x16xf32>
    %122 = vector.extract_strided_slice %108 {offsets = [56, 0], sizes = [8, 16], strides = [1, 1]} : vector<96x16xf32> to vector<8x16xf32>
    %123 = tpu.transpose %121, [1, 0] : vector<8x16xf32> -> vector<16x8xf32>
    %cst_50 = arith.constant dense<0.000000e+00> : vector<16x16xf32>
    %124 = tpu.matmul %123, %122, %cst_50 {dimension_numbers = #tpu.dot_dimension_numbers<[1], [0], [0], [1], [0, 0, 1, 1], [], []>} : vector<16x8xf32>, vector<8x16xf32>, vector<16x16xf32> -> vector<16x16xf32>
    %125 = tpu.concatenate %112, %116, %120, %124 in 0 : vector<16x16xf32>, vector<16x16xf32>, vector<16x16xf32>, vector<16x16xf32> -> vector<64x16xf32>
    %126 = arith.addf %125, %10 : vector<64x16xf32>
    %cst_51 = arith.constant dense<0xFF800000> : vector<64xf32>
    %127 = vector.multi_reduction <maximumf>, %126, %cst_51 [1] : vector<64x16xf32> to vector<64xf32>
    %128 = vector.shape_cast %127 : vector<64xf32> to vector<64x1xf32>
    %129 = vector.broadcast %128 : vector<64x1xf32> to vector<64x16xf32>
    %130 = arith.subf %126, %129 : vector<64x16xf32>
    %131 = math.exp %130 : vector<64x16xf32>
    %cst_52 = arith.constant dense<0.000000e+00> : vector<64xf32>
    %132 = vector.multi_reduction <add>, %131, %cst_52 [1] : vector<64x16xf32> to vector<64xf32>
    %133 = vector.shape_cast %132 : vector<64xf32> to vector<64x1xf32>
    %134 = tpu.reciprocal %133 {approx = true} : vector<64x1xf32> -> vector<64x1xf32>
    %135 = vector.broadcast %134 : vector<64x1xf32> to vector<64x16xf32>
    %136 = arith.mulf %131, %135 : vector<64x16xf32>
    %137 = vector.extract_strided_slice %108 {offsets = [64, 0], sizes = [8, 16], strides = [1, 1]} : vector<96x16xf32> to vector<8x16xf32>
    %138 = vector.extract_strided_slice %136 {offsets = [0, 0], sizes = [16, 16], strides = [1, 1]} : vector<64x16xf32> to vector<16x16xf32>
    %cst_53 = arith.constant dense<0.000000e+00> : vector<8x16xf32>
    %139 = tpu.matmul %137, %138, %cst_53 {dimension_numbers = #tpu.dot_dimension_numbers<[1], [1], [0], [0], [0, 0, 1, 0], [], []>} : vector<8x16xf32>, vector<16x16xf32>, vector<8x16xf32> -> vector<8x16xf32>
    %140 = vector.extract_strided_slice %108 {offsets = [72, 0], sizes = [8, 16], strides = [1, 1]} : vector<96x16xf32> to vector<8x16xf32>
    %141 = vector.extract_strided_slice %136 {offsets = [16, 0], sizes = [16, 16], strides = [1, 1]} : vector<64x16xf32> to vector<16x16xf32>
    %cst_54 = arith.constant dense<0.000000e+00> : vector<8x16xf32>
    %142 = tpu.matmul %140, %141, %cst_54 {dimension_numbers = #tpu.dot_dimension_numbers<[1], [1], [0], [0], [0, 0, 1, 0], [], []>} : vector<8x16xf32>, vector<16x16xf32>, vector<8x16xf32> -> vector<8x16xf32>
    %143 = vector.extract_strided_slice %108 {offsets = [80, 0], sizes = [8, 16], strides = [1, 1]} : vector<96x16xf32> to vector<8x16xf32>
    %144 = vector.extract_strided_slice %136 {offsets = [32, 0], sizes = [16, 16], strides = [1, 1]} : vector<64x16xf32> to vector<16x16xf32>
    %cst_55 = arith.constant dense<0.000000e+00> : vector<8x16xf32>
    %145 = tpu.matmul %143, %144, %cst_55 {dimension_numbers = #tpu.dot_dimension_numbers<[1], [1], [0], [0], [0, 0, 1, 0], [], []>} : vector<8x16xf32>, vector<16x16xf32>, vector<8x16xf32> -> vector<8x16xf32>
    %146 = vector.extract_strided_slice %108 {offsets = [88, 0], sizes = [8, 16], strides = [1, 1]} : vector<96x16xf32> to vector<8x16xf32>
    %147 = vector.extract_strided_slice %136 {offsets = [48, 0], sizes = [16, 16], strides = [1, 1]} : vector<64x16xf32> to vector<16x16xf32>
    %cst_56 = arith.constant dense<0.000000e+00> : vector<8x16xf32>
    %148 = tpu.matmul %146, %147, %cst_56 {dimension_numbers = #tpu.dot_dimension_numbers<[1], [1], [0], [0], [0, 0, 1, 0], [], []>} : vector<8x16xf32>, vector<16x16xf32>, vector<8x16xf32> -> vector<8x16xf32>
    %149 = tpu.concatenate %139, %142, %145, %148 in 0 : vector<8x16xf32>, vector<8x16xf32>, vector<8x16xf32>, vector<8x16xf32> -> vector<32x16xf32>
    %cst_57 = arith.constant dense<0.000000e+00> : vector<32x16xf32>
    %150 = tpu.matmul %2, %149, %cst_57 {dimension_numbers = #tpu.dot_dimension_numbers<[1], [0], [0], [1], [0, 0, 1, 1], [], []>} : vector<32x32xf32>, vector<32x16xf32>, vector<32x16xf32> -> vector<32x16xf32>
    %151 = arith.addf %150, %12 : vector<32x16xf32>
    %152 = arith.addf %151, %106 : vector<32x16xf32>
    %cst_58 = arith.constant dense<0.000000e+00> : vector<1x16xf32>
    %153 = tpu.matmul %8, %152, %cst_58 {dimension_numbers = #tpu.dot_dimension_numbers<[1], [0], [0], [1], [0, 0, 1, 1], [], []>} : vector<1x32xf32>, vector<32x16xf32>, vector<1x16xf32> -> vector<1x16xf32>
    %154 = vector.broadcast %153 : vector<1x16xf32> to vector<32x16xf32>
    %155 = arith.subf %152, %154 : vector<32x16xf32>
    %156 = arith.mulf %155, %155 : vector<32x16xf32>
    %cst_59 = arith.constant dense<0.000000e+00> : vector<1x16xf32>
    %157 = tpu.matmul %8, %156, %cst_59 {dimension_numbers = #tpu.dot_dimension_numbers<[1], [0], [0], [1], [0, 0, 1, 1], [], []>} : vector<1x32xf32>, vector<32x16xf32>, vector<1x16xf32> -> vector<1x16xf32>
    %cst_60 = arith.constant 9.99999974E-6 : f32
    %158 = vector.broadcast %cst_60 : f32 to vector<1x16xf32>
    %159 = arith.addf %157, %158 : vector<1x16xf32>
    %160 = math.rsqrt %159 : vector<1x16xf32>
    %161 = vector.broadcast %160 : vector<1x16xf32> to vector<32x16xf32>
    %162 = arith.mulf %155, %161 : vector<32x16xf32>
    %163 = arith.mulf %162, %13 : vector<32x16xf32>
    %164 = arith.addf %163, %14 : vector<32x16xf32>
    %cst_61 = arith.constant dense<0.000000e+00> : vector<64x16xf32>
    %165 = tpu.matmul %3, %164, %cst_61 {dimension_numbers = #tpu.dot_dimension_numbers<[1], [0], [0], [1], [0, 0, 1, 1], [], []>} : vector<64x32xf32>, vector<32x16xf32>, vector<64x16xf32> -> vector<64x16xf32>
    %166 = arith.addf %165, %15 : vector<64x16xf32>
    %cst_62 = arith.constant 0.000000e+00 : f32
    %167 = vector.broadcast %cst_62 : f32 to vector<64x16xf32>
    %168 = arith.maximumf %166, %167 : vector<64x16xf32>
    %cst_63 = arith.constant dense<0.000000e+00> : vector<32x16xf32>
    %169 = tpu.matmul %4, %168, %cst_63 {dimension_numbers = #tpu.dot_dimension_numbers<[1], [0], [0], [1], [0, 0, 1, 1], [], []>} : vector<32x64xf32>, vector<64x16xf32>, vector<32x16xf32> -> vector<32x16xf32>
    %170 = arith.addf %169, %16 : vector<32x16xf32>
    %171 = arith.addf %170, %164 : vector<32x16xf32>
    %cst_64 = arith.constant dense<0.000000e+00> : vector<1x16xf32>
    %172 = tpu.matmul %8, %171, %cst_64 {dimension_numbers = #tpu.dot_dimension_numbers<[1], [0], [0], [1], [0, 0, 1, 1], [], []>} : vector<1x32xf32>, vector<32x16xf32>, vector<1x16xf32> -> vector<1x16xf32>
    %173 = vector.broadcast %172 : vector<1x16xf32> to vector<32x16xf32>
    %174 = arith.subf %171, %173 : vector<32x16xf32>
    %175 = arith.mulf %174, %174 : vector<32x16xf32>
    %cst_65 = arith.constant dense<0.000000e+00> : vector<1x16xf32>
    %176 = tpu.matmul %8, %175, %cst_65 {dimension_numbers = #tpu.dot_dimension_numbers<[1], [0], [0], [1], [0, 0, 1, 1], [], []>} : vector<1x32xf32>, vector<32x16xf32>, vector<1x16xf32> -> vector<1x16xf32>
    %cst_66 = arith.constant 9.99999974E-6 : f32
    %177 = vector.broadcast %cst_66 : f32 to vector<1x16xf32>
    %178 = arith.addf %176, %177 : vector<1x16xf32>
    %179 = math.rsqrt %178 : vector<1x16xf32>
    %180 = vector.broadcast %179 : vector<1x16xf32> to vector<32x16xf32>
    %181 = arith.mulf %174, %180 : vector<32x16xf32>
    %182 = arith.mulf %181, %17 : vector<32x16xf32>
    %183 = arith.addf %182, %18 : vector<32x16xf32>
    %cst_67 = arith.constant dense<0.000000e+00> : vector<32x16xf32>
    %184 = tpu.matmul %5, %183, %cst_67 {dimension_numbers = #tpu.dot_dimension_numbers<[1], [0], [0], [1], [0, 0, 1, 1], [], []>} : vector<32x32xf32>, vector<32x16xf32>, vector<32x16xf32> -> vector<32x16xf32>
    %185 = arith.mulf %184, %19 : vector<32x16xf32>
    %cst_68 = arith.constant dense<0.000000e+00> : vector<8x32xf32>
    %186 = tpu.matmul %20, %185, %cst_68 {dimension_numbers = #tpu.dot_dimension_numbers<[1], [1], [0], [0], [0, 0, 1, 0], [], []>} : vector<8x16xf32>, vector<32x16xf32>, vector<8x32xf32> -> vector<8x32xf32>
    %cst_69 = arith.constant dense<0.000000e+00> : vector<8x128xf32>
    %187 = tpu.matmul %186, %6, %cst_69 {dimension_numbers = #tpu.dot_dimension_numbers<[1], [0], [0], [1], [0, 0, 1, 1], [], []>} : vector<8x32xf32>, vector<32x128xf32>, vector<8x128xf32> -> vector<8x128xf32>
    %188 = arith.addf %187, %7 : vector<8x128xf32>
    %c0_70 = arith.constant 0 : index
    %c0_71 = arith.constant 0 : index
    %189 = vector.load %arg2[%c0_70, %c0_71] : memref<8x128xf32, #tpu.memory_space<vmem>>, vector<8x128xf32>
    tpu.vector_store %arg2[%c0_70, %c0_71], %188 {strides = array<i32>} : memref<8x128xf32, #tpu.memory_space<vmem>>, vector<8x128xf32>,
    return
  }
}

</mosaic_0001>

<bundles_post_ra>
// kernel: model_forward.1
= control target key start
LH: loop header
LB: loop body
LE: loop exit
PB: predicated region body
PF: predicated region fallthrough
CT: control target
= control target key end

     0   :  { %7 = vsyncpa [#allocation3], 0  ;;  %s4653_s9 = smov [#allocation2]   ;;  %s5356_s0 = inlined_call_operand.vmem [shape: s32[1,16], index: 0, kind: input, shape index: {}]   ;;  %s5357_s1 = inlined_call_operand.hbm [shape: f32[824,128], index: 1, kind: input, shape index: {}]   ;;  %s5358_s2 = inlined_call_operand.vmem [shape: f32[8,128], index: 2, kind: output, shape index: {}]  }
   0x1   :  { %s15_s10 = sshll.u32 %s4653_s9, 4  ;;  %s16_s10 = int_to_ptr.vmem [resolvable:$true] %s15_s10 }
   0x2   :  { %s4639_s11 = scalar_lea.vmem %s16_s10, 13184  ;;  %p4644_p1 = scmp.lt.s32.totalorder %s16_s10, %s16_s10 }
   0x3   :  { %p4640_p0 = scmp.ne.s32.totalorder %s16_s10, %s4639_s11  ;;  %p4645_p2 = scmp.lt.s32.totalorder %s4639_s11, %s4639_s11 }
   0x5   :  { %p4646_p3 = por %p4645_p2, %p4644_p1 }
   0x7   :  { %p4647_p4 = pnand %p4646_p3, %p4640_p0 }
   0x9   :  { %4650 = shalt.err (!%p4647_p4)
}
   0xa   :  { %s4654_s12 = smov 128   ;;  %s4655_s13 = smov 8  }
   0xb   :  { %21 = dma.hbm_to_vmem [thread:$0]  %s5357_s1, 13184, %s16_s10, [#allocation3], %s4654_s12, %s4654_s12, %s4655_s13  }
   0xc   :  { %4651 = dma.done.wait [#allocation3], 13184  }
   0xd   :  { %4652 = vsyncadd [#allocation3], 4294954112  ;;  %v129_v0 = vlaneseq  ;;  %vm140_vm0 = vcmask 130048   ;;  %v3829_v3 = vld [vmem:[%s5356_s0] ss:$0 sm:$0xff]  ;;  %v4656_v5 = vmov 1.0  }
   0xe   :  { %v25_v4 = vld [vmem:[#allocation2] sm:$0xff]  ;;  %v26_v6 = vld [vmem:[#allocation2 + $0x8] sm:$0xff]  ;;  %v27_v7 = vld [vmem:[#allocation2 + $0x10] sm:$0xff]  ;;  %vm238_vm3 = vcmask 261120   ;;  %vm432_vm4 = vcmask 64512   ;;  %vm4658_vm5 = vmmov 0  }
   0xf   :  { %v4677_v1 = vshrl.u32 %v129_v0, 7  ;;  %4162 = vmatprep.mubr.msk.f32.mxu1 %vm140_vm0, %v25_v4  ;;  %v28_v8 = vld [vmem:[#allocation2 + $0x18] sm:$0xff]  ;;  %v4688_v9 = vld [vmem:[#allocation2 + $0x20] sm:$0xff]  ;;  %v70_v12 = vld [vmem:[#allocation2 + $0x168] sm:$0xff]  ;;  %vm1675_vm6 = vcmask 523264  }
  0x10   :  { %v69_v14 = vld [vmem:[#allocation2 + $0x160] sm:$0xff]  ;;  %v68_v16 = vld [vmem:[#allocation2 + $0x158] sm:$0xff]  ;;  %v67_v19 = vld [vmem:[#allocation2 + $0x150] sm:$0xff] }
  0x11   :  { %v131_v2 = vadd.s32 8, %v4677_v1  ;;  %vm136_vm1 = vcmp.eq.s32.totalorder %v4677_v1, %v3829_v3  ;;  %v4706_v22 = vld [vmem:[#allocation2 + $0x28] sm:$0xff]  ;;  %v4709_v23 = vld [vmem:[#allocation2 + $0x30] sm:$0xff]  ;;  %v4716_v24 = vld [vmem:[#allocation2 + $0x38] sm:$0xff] }
  0x12   :  { %v4718_v25 = vld [vmem:[#allocation2 + $0x40] sm:$0xff]  ;;  %v4724_v26 = vld [vmem:[#allocation2 + $0x48] sm:$0xff]  ;;  %v4726_v27 = vld [vmem:[#allocation2 + $0x50] sm:$0xff] }
  0x13   :  { %vm137_vm2 = vcmp.eq.s32.totalorder %v131_v2, %v3829_v3  ;;  %v4732_v28 = vld [vmem:[#allocation2 + $0x58] sm:$0xff]  ;;  %v4736_v30 = vld [vmem:[#allocation2 + $0x1b0] sm:$0xff]  ;;  %v4739_v34 = vld [vmem:[#allocation2 + $0x1c0] sm:$0xff] }
  0x14   :  { %4158 = vmatprep.subr.msk.mxu1 %vm137_vm2, %v4656_v5  ;;  %v4741_v35 = vld [vmem:[#allocation2 + $0x1b8] sm:$0xff]  ;;  %v4747_v41 = vld [vmem:[#allocation2 + $0x1d0] sm:$0xff]  ;;  %v4749_v42 = vld [vmem:[#allocation2 + $0x1c8] sm:$0xff] }
  0x15   :  { %4159 = vmatpush3.msk.msra.mxu1 %vm137_vm2, %v4656_v5  ;;  %v4745_v39 = vld [vmem:[#allocation2 + $0x1d8] sm:$0xff]  ;;  %v4754_v50 = vld [vmem:[#allocation2 + $0x1e0] sm:$0xff]  ;;  %v4759_v55 = vld [vmem:[#allocation2 + $0x1e8] sm:$0xff] }
  0x16   :  { %4160 = vmatprep.subr.msk.mxu1 %vm136_vm1, %v4656_v5  ;;  %v4768_v61 = vld [vmem:[#allocation2 + $0x60] sm:$0xff]  ;;  %v4770_v62 = vld [vmem:[#allocation2 + $0x68] sm:$0xff]  ;;  %v4776_v63 = vld [vmem:[#allocation2 + $0x178] sm:$0xff] }
  0x17   :  { %4161 = vmatpush3.msk.msra.mxu1 %vm136_vm1, %v4656_v5  ;;  %v4780_v5 = vld [vmem:[#allocation2 + $0x188] sm:$0xff] }
  0x18   :  { %4163 = vmatmul.mubr.msk.f32.vlgmr.msra.gmra.mxu1 %vm140_vm0, %v26_v6 }
  0x19   :  { %4165 = vmatprep.mubr.msk.f32.mxu1 %vm140_vm0, %v27_v7  ;;  %v4782_v7 = vld [vmem:[#allocation2 + $0x180] sm:$0xff] }
  0x1c   :  { %4166 = vmatmul.mubr.msk.f32.gmra.mxu1 %vm140_vm0, %v28_v8 }
  0x1d   :  { %4176 = vmatprep.mubr.msk.f32.mxu1 %vm238_vm3, %v4688_v9 }
  0xd8   :  { %v4164_v10 = vpop.f32.mrf.mxu1 }
  0xd9   :  { %v4698_v20 = vadd.f32 %v4164_v10, %v68_v16  ;;  %v4785_v10 = vld [vmem:[#allocation2 + $0x170] sm:$0xff] }
  0xda   :  { %v219_v11 = vpop.f32.mrf.mxu1  ;;  %v4789_v16 = vld [vmem:[#allocation2 + $0x70] sm:$0xff] }
  0xdb   :  { %v4702_v21 = vadd.f32 %v219_v11, %v67_v19 }
  0xdc   :  { %v4167_v13 = vpop.f32.mrf.mxu1 }
  0xdd   :  { %v4692_v15 = vadd.f32 %v4167_v13, %v70_v12 }
  0xde   :  { %v229_v17 = vpop.f32.mrf.mxu1 }
  0xdf   :  { %v4694_v18 = vadd.f32 %v229_v17, %v69_v14  ;;  %4168 = vmatprep.subr.mxu1 %v4692_v15 }
  0xe0   :  { %4169 = vmatpush3.msra.mxu1 %v4692_v15 }
  0xe1   :  { %4170 = vmatprep.subr.mxu1 %v4694_v18 }
  0xe2   :  { %4171 = vmatpush3.msra.mxu1 %v4694_v18 }
  0xe3   :  { %4172 = vmatprep.subr.mxu1 %v4698_v20 }
  0xe4   :  { %4173 = vmatpush3.msra.mxu1 %v4698_v20 }
  0xe5   :  { %4174 = vmatprep.subr.mxu1 %v4702_v21 }
  0xe6   :  { %4175 = vmatpush3.msra.mxu1 %v4702_v21 }
  0xe7   :  { %4177 = vmatmul.mubr.msk.f32.vlgmr.msra.gmra.mxu1 %vm238_vm3, %v4706_v22 }
  0xe8   :  { %4179 = vmatprep.mubr.msk.f32.mxu1 %vm238_vm3, %v4709_v23 }
  0xeb   :  { %4180 = vmatmul.mubr.msk.f32.gmra.mxu1 %vm238_vm3, %v4716_v24 }
  0xec   :  { %4182 = vmatprep.mubr.msk.f32.mxu1 %vm238_vm3, %v4718_v25 }
  0xef   :  { %4183 = vmatmul.mubr.msk.f32.gmra.mxu1 %vm238_vm3, %v4724_v26 }
  0xf0   :  { %4185 = vmatprep.mubr.msk.f32.mxu1 %vm238_vm3, %v4726_v27 }
  0xf3   :  { %4186 = vmatmul.mubr.msk.f32.gmra.mxu1 %vm238_vm3, %v4732_v28 }
  0xf4   :  { %4188 = vmatprep.mubr.msk.f32.mxu1 %vm238_vm3, %v4768_v61 }
  0xf7   :  { %4189 = vmatmul.mubr.msk.f32.gmra.mxu1 %vm238_vm3, %v4770_v62 }
  0xf8   :  { %4191 = vmatprep.mubr.msk.f32.mxu1 %vm238_vm3, %v4789_v16 }
 0x1a7   :  { %v4178_v29 = vpop.f32.mrf.mxu1 }
 0x1a8   :  { %v347_v38 = vadd.f32 %v4178_v29, %v4741_v35  ;;  %v4795_v29 = vld [vmem:[#allocation2 + $0x78] sm:$0xff] }
 0x1a9   :  { %v341_v31 = vpop.f32.mrf.mxu1  ;;  %4192 = vmatmul.mubr.msk.f32.gmra.mxu1 %vm238_vm3, %v4795_v29 }
 0x1aa   :  { %v342_v32 = vadd.f32 %v341_v31, %v4736_v30  ;;  %v4797_v31 = vld [vmem:[#allocation2 + $0x198] sm:$0xff] }
 0x1ab   :  { %v4181_v33 = vpop.f32.mrf.mxu1 }
 0x1ac   :  { %400 = vxpose.xlu0.b32.start.end [1/1] (short) (narrow) %v342_v32, 16  ;;  %v357_v46 = vadd.f32 %v4181_v33, %v4749_v42  ;;  %v4799_v33 = vld [vmem:[#allocation2 + $0x1a8] sm:$0xff] }
 0x1ad   :  { %v351_v36 = vpop.f32.mrf.mxu1 }
 0x1ae   :  { %v352_v37 = vadd.f32 %v351_v36, %v4739_v34 }
 0x1af   :  { %v4184_v40 = vpop.f32.mrf.mxu1 }
 0x1b0   :  { %627 = vxpose.xlu1.b32.start.end [1/1] (short) (narrow) %v352_v37, 16  ;;  %v367_v44 = vadd.f32 %v4184_v40, %v4745_v39  ;;  %v4803_v37 = vld [vmem:[#allocation2 + $0x1a0] sm:$0xff] }
 0x1b1   :  { %514 = vxpose.xlu0.b32.start.end [1/1] (short) (narrow) %v347_v38, 16  ;;  %v361_v43 = vpop.f32.mrf.mxu1 }
 0x1b2   :  { %v362_v45 = vadd.f32 %v361_v43, %v4747_v41 }
 0x1b3   :  { %v4187_v47 = vpop.f32.mrf.mxu1 }
 0x1b4   :  { %4194 = vmatprep.subr.mxu0 %v362_v45  ;;  %v377_v57 = vadd.f32 %v4187_v47, %v4759_v55 }
 0x1b5   :  { %740 = vxpose.xlu1.b32.start.end [1/1] (short) (narrow) %v357_v46, 16  ;;  %4195 = vmatpush3.msra.mxu0 %v362_v45  ;;  %v371_v49 = vpop.f32.mrf.mxu1 }
 0x1b6   :  { %4199 = vmatprep.subr.mxu0 %v367_v44  ;;  %v372_v51 = vadd.f32 %v371_v49, %v4754_v50 }
 0x228   :  { %v416_v48 = vpop.trf.xlu0 }
 0x229   :  { %4196 = vmatprep.mubr.msk.f32.mxu0 %vm432_vm4, %v416_v48 }
 0x22c   :  { %v417_v52 = vpop.trf.xlu0  ;;  %v643_v53 = vpop.trf.xlu1 }
 0x22d   :  { %4197 = vmatmul.mubr.msk.f32.vlgmr.msra.gmra.mxu0 %vm432_vm4, %v417_v52 }
 0x22e   :  { %4200 = vmatpush3.msra.mxu0 %v367_v44  ;;  %v4808_v44 = vld [vmem:[#allocation2 + $0x190] sm:$0xff] }
 0x22f   :  { %4204 = vmatprep.subr.mxu0 %v372_v51 }
 0x230   :  { %v530_v54 = vpop.trf.xlu0  ;;  %v644_v56 = vpop.trf.xlu1 }
 0x231   :  { %4201 = vmatprep.mubr.msk.f32.mxu0 %vm432_vm4, %v530_v54 }
 0x234   :  { %v531_v58 = vpop.trf.xlu0  ;;  %v756_v59 = vpop.trf.xlu1 }
 0x235   :  { %4202 = vmatmul.mubr.msk.f32.vlgmr.msra.gmra.mxu0 %vm432_vm4, %v531_v58 }
 0x236   :  { %4206 = vmatprep.mubr.msk.f32.mxu0 %vm432_vm4, %v643_v53  ;;  %4205 = vmatpush3.msra.mxu0 %v372_v51 }
 0x237   :  { %4209 = vmatprep.subr.mxu0 %v377_v57 }
 0x238   :  { %v757_v60 = vpop.trf.xlu1 }
 0x239   :  { %4207 = vmatmul.mubr.msk.f32.vlgmr.msra.gmra.mxu0 %vm432_vm4, %v644_v56 }
 0x23a   :  { %4210 = vmatpush3.msra.mxu0 %v377_v57  ;;  %4211 = vmatprep.mubr.msk.f32.mxu0 %vm432_vm4, %v756_v59 }
 0x23d   :  { %4212 = vmatmul.mubr.msk.f32.vlgmr.msra.gmra.mxu0 %vm432_vm4, %v757_v60 }
 0x2ed   :  { %v4198_v0 = vpop.f32.mrf.mxu0 }
 0x2ee   :  { %v854_v2 = vadd.f32 %v4198_v0, %v4776_v63 }
 0x2ef   :  { %v505_v4 = vpop.f32.mrf.mxu0 }
 0x2f0   :  { %v864_v3 = vsel %vm140_vm0, %v854_v2, -inf  ;;  %v853_v17 = vadd.f32 %v505_v4, %v4785_v10 }
 0x2f1   :  { %865 = vmax.xlane.f32.xlu1 %v864_v3 }
 0x2f2   :  { %v861_v43 = vsel %vm140_vm0, %v853_v17, -inf }
 0x2f5   :  { %v4203_v6 = vpop.f32.mrf.mxu0 }
 0x2f6   :  { %v856_v8 = vadd.f32 %v4203_v6, %v4780_v5 }
 0x2f7   :  { %v618_v11 = vpop.f32.mrf.mxu0 }
 0x2f8   :  { %v855_v12 = vadd.f32 %v618_v11, %v4782_v7  ;;  %v870_v13 = vsel %vm140_vm0, %v856_v8, -inf }
 0x2f9   :  { %871 = vmax.xlane.f32.xlu0 %v870_v13  ;;  %v4208_v14 = vpop.f32.mrf.mxu0 }
 0x2fa   :  { %v867_v19 = vsel %vm140_vm0, %v855_v12, -inf  ;;  %v858_v38 = vadd.f32 %v4208_v14, %v4797_v31 }
 0x2fb   :  { %868 = vmax.xlane.f32.xlu1 %v867_v19  ;;  %v731_v32 = vpop.f32.mrf.mxu0 }
 0x2fc   :  { %v857_v48 = vadd.f32 %v731_v32, %v4808_v44  ;;  %v876_v49 = vsel %vm140_vm0, %v858_v38, -inf }
 0x2fd   :  { %v4213_v36 = vpop.f32.mrf.mxu0 }
 0x2fe   :  { %v860_v40 = vadd.f32 %v4213_v36, %v4799_v33  ;;  %v873_v52 = vsel %vm140_vm0, %v857_v48, -inf }
 0x2ff   :  { %862 = vmax.xlane.f32.xlu1 %v861_v43  ;;  %v844_v45 = vpop.f32.mrf.mxu0 }
 0x300   :  { %v882_v46 = vsel %vm140_vm0, %v860_v40, -inf  ;;  %v859_v47 = vadd.f32 %v844_v45, %v4803_v37 }
 0x301   :  { %883 = vmax.xlane.f32.xlu0 %v882_v46 }
 0x302   :  { %v879_v51 = vsel %vm140_vm0, %v859_v47, -inf }
 0x303   :  { %877 = vmax.xlane.f32.xlu1 %v876_v49 }
 0x305   :  { %880 = vmax.xlane.f32.xlu0 %v879_v51 }
 0x307   :  { %874 = vmax.xlane.f32.xlu1 %v873_v52 }
 0x37a   :  { %v866_v53 = vpop.xlane.xlu1 %865 }
 0x37b   :  { %v886_v54 = vsub.f32 %v854_v2, %v866_v53 }
 0x37d   :  { %v895_v56 = vmul.f32 1.442695, %v886_v54 }
 0x37f   :  { %4558 = vpow2.f32 %v895_v56 }
 0x382   :  { %v872_v57 = vpop.xlane.xlu0 %871 }
 0x383   :  { %v888_v58 = vsub.f32 %v856_v8, %v872_v57 }
 0x384   :  { %v869_v59 = vpop.xlane.xlu1 %868 }
 0x385   :  { %v899_v60 = vmul.f32 1.442695, %v888_v58  ;;  %v887_v0 = vsub.f32 %v855_v12, %v869_v59 }
 0x387   :  { %4560 = vpow2.f32 %v899_v60  ;;  %v897_v3 = vmul.f32 1.442695, %v887_v0 }
 0x388   :  { %v863_v4 = vpop.xlane.xlu1 %862 }
 0x389   :  { %4562 = vpow2.f32 %v897_v3  ;;  %v885_v6 = vsub.f32 %v853_v17, %v863_v4  ;;  %v5369_v4 = vmov 0.0  }
 0x38a   :  { %v884_v11 = vpop.xlane.xlu0 %883  ;;  %4214 = vmatprep.subr.mxu0 %v5369_v4  ;;  %4221 = vmatprep.subr.mxu1 %v5369_v4 }
 0x38b   :  { %v893_v13 = vmul.f32 1.442695, %v885_v6  ;;  %v892_v14 = vsub.f32 %v860_v40, %v884_v11  ;;  %4225 = vmatprep.mubr.msk.f32.mxu1 %vm4658_vm5, %v5369_v4  ;;  %4218 = vmatprep.mubr.msk.f32.mxu0 %vm4658_vm5, %v5369_v4 }
 0x38c   :  { %v4559_v19 = vpop.eup %4558  ;;  %v878_v32 = vpop.xlane.xlu1 %877 }
 0x38d   :  { %4564 = vpow2.f32 %v893_v13  ;;  %v907_v36 = vmul.f32 1.442695, %v892_v14  ;;  %v890_v2 = vsub.f32 %v858_v38, %v878_v32  ;;  %v912_v43 = vsel %vm140_vm0, %v4559_v19, 0.0 }
 0x38e   :  { %913 = vadd.xlane.f32.xlu1 %v912_v43  ;;  %v881_v8 = vpop.xlane.xlu0 %880 }
 0x38f   :  { %4566 = vpow2.f32 %v907_v36  ;;  %v903_v45 = vmul.f32 1.442695, %v890_v2  ;;  %v891_v12 = vsub.f32 %v859_v47, %v881_v8 }
 0x390   :  { %v875_v46 = vpop.xlane.xlu1 %874 }
 0x391   :  { %4568 = vpow2.f32 %v903_v45  ;;  %v905_v49 = vmul.f32 1.442695, %v891_v12  ;;  %v889_v51 = vsub.f32 %v857_v48, %v875_v46 }
 0x393   :  { %4570 = vpow2.f32 %v905_v49  ;;  %v901_v17 = vmul.f32 1.442695, %v889_v51  ;;  %v4190_v49 = vpop.f32.mrf.mxu1  ;;  %v4839_v51 = vld [vmem:[#allocation2 + $0x1f8] sm:$0xff] }
 0x394   :  { %v4561_v52 = vpop.eup %4560 }
 0x395   :  { %4572 = vpow2.f32 %v901_v17  ;;  %v918_v40 = vsel %vm140_vm0, %v4561_v52, 0.0 }
 0x396   :  { %v4563_v53 = vpop.eup %4562  ;;  %919 = vadd.xlane.f32.xlu0 %v918_v40  ;;  %v381_v40 = vpop.f32.mrf.mxu1 }
 0x397   :  { %v915_v38 = vsel %vm140_vm0, %v4563_v53, 0.0 }
 0x39a   :  { %v4565_v54 = vpop.eup %4564  ;;  %916 = vadd.xlane.f32.xlu0 %v915_v38  ;;  %v4842_v38 = vld [vmem:[#allocation2 + $0x1f0] sm:$0xff] }
 0x39b   :  { %v909_v56 = vsel %vm140_vm0, %v4565_v54, 0.0 }
 0x39c   :  { %v4567_v57 = vpop.eup %4566  ;;  %910 = vadd.xlane.f32.xlu1 %v909_v56 }
 0x39d   :  { %v930_v47 = vsel %vm140_vm0, %v4567_v57, 0.0 }
 0x39e   :  { %v4569_v58 = vpop.eup %4568  ;;  %931 = vadd.xlane.f32.xlu0 %v930_v47  ;;  %v387_v47 = vadd.f32 %v4190_v49, %v4839_v51 }
 0x39f   :  { %v924_v48 = vsel %vm140_vm0, %v4569_v58, 0.0 }
 0x3a0   :  { %v4822_v59 = vpop.eup %4570  ;;  %925 = vadd.xlane.f32.xlu1 %v924_v48 }
 0x3a1   :  { %v927_v60 = vsel %vm140_vm0, %v4822_v59, 0.0 }
 0x3a2   :  { %v4826_v0 = vpop.eup %4572  ;;  %928 = vadd.xlane.f32.xlu0 %v927_v60 }
 0x3a3   :  { %v921_v3 = vsel %vm140_vm0, %v4826_v0, 0.0 }
 0x3a4   :  { %922 = vadd.xlane.f32.xlu1 %v921_v3 }
 0x417   :  { %v914_v6 = vpop.xlane.xlu1 %913 }
 0x418   :  { %4574 = vrcp.f32 %v914_v6 }
 0x41f   :  { %v920_v11 = vpop.xlane.xlu0 %919 }
 0x420   :  { %4576 = vrcp.f32 %v920_v11  ;;  %v4852_v11 = vld [vmem:[#allocation2 + $0x208] sm:$0xff] }
 0x423   :  { %v917_v13 = vpop.xlane.xlu0 %916 }
 0x424   :  { %4578 = vrcp.f32 %v917_v13  ;;  %v4193_v13 = vpop.f32.mrf.mxu1 }
 0x425   :  { %v4575_v14 = vpop.eup %4574  ;;  %v911_v32 = vpop.xlane.xlu1 %910 }
 0x426   :  { %4580 = vrcp.f32 %v911_v32  ;;  %v942_v36 = vmul.f32 %v4575_v14, %v4559_v19  ;;  %v391_v32 = vpop.f32.mrf.mxu1 }
 0x427   :  { %v932_v2 = vpop.xlane.xlu0 %931 }
 0x428   :  { %4582 = vrcp.f32 %v932_v2  ;;  %4215 = vmatpush3.xpose.msk.msra.mxu0 %vm140_vm0, %v942_v36  ;;  %v4865_v36 = vld [vmem:[#allocation2 + $0x200] sm:$0xff] }
 0x429   :  { %v926_v43 = vpop.xlane.xlu1 %925  ;;  %4216 = vmatprep.subr.mxu0 %v5369_v4 }
 0x42a   :  { %4584 = vrcp.f32 %v926_v43  ;;  %v4875_v43 = vld [vmem:[#allocation2 + $0x80] sm:$0xff] }
 0x42b   :  { %v929_v8 = vpop.xlane.xlu0 %928 }
 0x42c   :  { %4586 = vrcp.f32 %v929_v8 }
 0x42d   :  { %v4577_v45 = vpop.eup %4576  ;;  %v923_v12 = vpop.xlane.xlu1 %922 }
 0x42e   :  { %4588 = vrcp.f32 %v923_v12  ;;  %v944_v46 = vmul.f32 %v4577_v45, %v4561_v52  ;;  %v382_v52 = vadd.f32 %v381_v40, %v4842_v38  ;;  %v4879_v40 = vld [vmem:[#allocation2 + $0x88] sm:$0xff] }
 0x430   :  { %4222 = vmatpush3.xpose.msk.msra.mxu1 %vm140_vm0, %v944_v46 }
 0x431   :  { %v4579_v19 = vpop.eup %4578  ;;  %4223 = vmatprep.subr.mxu1 %v5369_v4 }
 0x432   :  { %v943_v17 = vmul.f32 %v4579_v19, %v4563_v53 }
 0x433   :  { %v4581_v56 = vpop.eup %4580 }
 0x434   :  { %4224 = vmatpush3.xpose.msk.msra.mxu1 %vm140_vm0, %v943_v17  ;;  %v941_v48 = vmul.f32 %v4581_v56, %v4565_v54  ;;  %v4881_v56 = vld [vmem:[#allocation2 + $0x90] sm:$0xff] }
 0x435   :  { %v4583_v60 = vpop.eup %4582  ;;  %4235 = vmatprep.subr.mxu1 %v5369_v4 }
 0x436   :  { %4217 = vmatpush3.xpose.msk.msra.mxu0 %vm140_vm0, %v941_v48  ;;  %v948_v3 = vmul.f32 %v4583_v60, %v4567_v57 }
 0x437   :  { %v4585_v6 = vpop.eup %4584  ;;  %4226 = vmatmul.mubr.msk.f32.vlgmr.msra.gmra.mxu1 %vm140_vm0, %v387_v47  ;;  %4228 = vmatprep.subr.mxu0 %v5369_v4  ;;  %v4888_v47 = vld [vmem:[#allocation2 + $0x98] sm:$0xff] }
 0x438   :  { %4236 = vmatpush3.xpose.msk.msra.mxu1 %vm140_vm0, %v948_v3  ;;  %v946_v53 = vmul.f32 %v4585_v6, %v4569_v58  ;;  %4239 = vmatprep.mubr.msk.f32.mxu1 %vm4658_vm5, %v5369_v4  ;;  %v397_v58 = vadd.f32 %v4193_v13, %v4852_v11  ;;  %v4896_v3 = vld [vmem:[#allocation2 + $0x218] sm:$0xff] }
 0x439   :  { %v4587_v54 = vpop.eup %4586  ;;  %4219 = vmatmul.mubr.msk.f32.vlgmr.msra.gmra.mxu0 %vm140_vm0, %v382_v52  ;;  %4237 = vmatprep.subr.mxu1 %v5369_v4  ;;  %v4894_v52 = vld [vmem:[#allocation2 + $0x228] sm:$0xff]  ;;  %5389 = vst [vmem:[#allocation5_spill] sm:$0xff] %v4896_v3 }
 0x43a   :  { %4229 = vmatpush3.xpose.msk.msra.mxu0 %vm140_vm0, %v946_v53  ;;  %v947_v57 = vmul.f32 %v4587_v54, %v4822_v59  ;;  %4232 = vmatprep.mubr.msk.f32.mxu0 %vm4658_vm5, %v5369_v4  ;;  %v392_v59 = vadd.f32 %v391_v32, %v4865_v36  ;;  %v4898_v53 = vld [vmem:[#allocation2 + $0x220] sm:$0xff]  ;;  %v4901_v54 = vld [vmem:[#allocation2 + $0x210] sm:$0xff] }
 0x43b   :  { %v4589_v14 = vpop.eup %4588  ;;  %4230 = vmatprep.subr.mxu0 %v5369_v4  ;;  %5390 = vst [vmem:[#allocation6_spill] sm:$0xff] %v4898_v53  ;;  %5391 = vst [vmem:[#allocation7_spill] sm:$0xff] %v4901_v54 }
 0x43c   :  { %4238 = vmatpush3.xpose.msk.msra.mxu1 %vm140_vm0, %v947_v57  ;;  %v945_v2 = vmul.f32 %v4589_v14, %v4826_v0 }
 0x43d   :  { %4256 = vmatprep.subr.mxu1 %v5369_v4 }
 0x43e   :  { %4231 = vmatpush3.xpose.msk.msra.mxu0 %vm140_vm0, %v945_v2 }
 0x43f   :  { %4240 = vmatmul.mubr.msk.f32.vlgmr.msra.gmra.mxu1 %vm140_vm0, %v397_v58 }
 0x440   :  { %4264 = vmatprep.mubr.msk.f32.mxu1 %vm4658_vm5, %v5369_v4 }
 0x441   :  { %4233 = vmatmul.mubr.msk.f32.vlgmr.msra.gmra.mxu0 %vm140_vm0, %v392_v59 }
 0x442   :  { %4250 = vmatprep.mubr.msk.f32.mxu0 %vm238_vm3, %v4875_v43 }
 0x4f7   :  { %v1103_v8 = vpop.f32.mrf.mxu1 }
 0x4f9   :  { %v1024_v0 = vpop.f32.mrf.mxu0  ;;  %v4227_v45 = vpop.f32.mrf.mxu1 }
 0x4fa   :  { %v4912_v45 = vld [vmem:[#allocation2 + $0x148] sm:$0x1] }
 0x4fb   :  { %v4220_v12 = vpop.f32.mrf.mxu0 }
 0x4ff   :  { %v1261_v46 = vpop.f32.mrf.mxu1 }
 0x500   :  { %4242 = vmatprep.subr.mxu0 %v1261_v46 }
 0x501   :  { %v1182_v49 = vpop.f32.mrf.mxu0  ;;  %4243 = vmatpush3.msra.mxu0 %v1261_v46  ;;  %v4241_v19 = vpop.f32.mrf.mxu1 }
 0x502   :  { %4244 = vmatprep.subr.mxu0 %v1182_v49 }
 0x503   :  { %v4234_v17 = vpop.f32.mrf.mxu0  ;;  %4245 = vmatpush3.msra.mxu0 %v1182_v49 }
 0x504   :  { %4246 = vmatprep.subr.mxu0 %v1103_v8 }
 0x505   :  { %4247 = vmatpush3.msra.mxu0 %v1103_v8 }
 0x506   :  { %4248 = vmatprep.subr.mxu0 %v1024_v0 }
 0x507   :  { %4249 = vmatpush3.msra.mxu0 %v1024_v0 }
 0x508   :  { %4251 = vmatmul.mubr.msk.f32.vlgmr.msra.gmra.mxu0 %vm238_vm3, %v4879_v40  ;;  %4267 = vmatprep.subr.mxu0 %v5369_v4 }
 0x509   :  { %4253 = vmatprep.mubr.msk.f32.mxu0 %vm238_vm3, %v4881_v56 }
 0x50c   :  { %4254 = vmatmul.mubr.msk.f32.gmra.mxu0 %vm238_vm3, %v4888_v47 }
 0x50d   :  { %4275 = vmatprep.mubr.msk.f32.mxu0 %vm4658_vm5, %v5369_v4 }
 0x5c8   :  { %v4252_v48 = vpop.f32.mrf.mxu0 }
 0x5c9   :  { %v1349_v14 = vadd.f32 %v4252_v48, %v4896_v3 }
 0x5ca   :  { %v1343_v60 = vpop.f32.mrf.mxu0 }
 0x5cb   :  { %v1344_v2 = vadd.f32 %v1343_v60, %v4901_v54  ;;  %v1363_v8 = vadd.f32 %v1349_v14, %v4698_v20 }
 0x5cc   :  { %v4255_v6 = vpop.f32.mrf.mxu0 }
 0x5cd   :  { %v1359_v13 = vadd.f32 %v4255_v6, %v4894_v52  ;;  %v1362_v0 = vadd.f32 %v1344_v2, %v4702_v21  ;;  %v4926_v6 = vld [vmem:[#allocation2 + $0xa0] sm:$0xff]  ;;  %v4931_v2 = vld [vmem:[#allocation2 + $0x248] sm:$0xff] }
 0x5ce   :  { %v1353_v57 = vpop.f32.mrf.mxu0  ;;  %5392 = vst [vmem:[#allocation8_spill] sm:$0xff] %v4926_v6  ;;  %5393 = vst [vmem:[#allocation9_spill] sm:$0xff] %v4931_v2 }
 0x5cf   :  { %v1365_v58 = vadd.f32 %v1359_v13, %v4692_v15  ;;  %v1354_v32 = vadd.f32 %v1353_v57, %v4898_v53  ;;  %v4918_v15 = vsub.s32 0, %v4677_v1  ;;  %v5020_v53 = vld [vmem:[#allocation2 + $0x280] sm:$0xff] }
 0x5d1   :  { %v1364_v59 = vadd.f32 %v1354_v32, %v4694_v18  ;;  %4257 = vmatpush3.msra.mxu1 %v1365_v58 }
 0x5d2   :  { %4258 = vmatprep.subr.mxu1 %v5369_v4 }
 0x5d3   :  { %4259 = vmatpush3.msra.mxu1 %v1364_v59 }
 0x5d4   :  { %4260 = vmatprep.subr.mxu1 %v5369_v4 }
 0x5d5   :  { %4261 = vmatpush3.msra.mxu1 %v1363_v8 }
 0x5d6   :  { %4262 = vmatprep.subr.mxu1 %v5369_v4 }
 0x5d7   :  { %4263 = vmatpush3.msra.mxu1 %v1362_v0 }
 0x5d8   :  { %4265 = vmatmul.mubr.msk.f32.vlgmr.msra.gmra.mxu1 %vm238_vm3, %v4912_v45 }
 0x5d9   :  { %4286 = vmatprep.mubr.msk.f32.mxu1 %vm238_vm3, %v4926_v6 }
 0x698   :  { %v1435_v18 = vpop.f32.mrf.mxu1 }
 0x699   :  { %v1442_v20 = vrot.slane %v1435_v18, %v4918_v15 }
 0x69a   :  { %v4266_v12 = vpop.f32.mrf.mxu1 }
 0x69b   :  { %v1445_v46 = vsub.f32 %v1364_v59, %v1442_v20  ;;  %v1446_v49 = vsub.f32 %v1365_v58, %v1442_v20  ;;  %v1444_v19 = vsub.f32 %v1363_v8, %v1442_v20  ;;  %v1443_v17 = vsub.f32 %v1362_v0, %v1442_v20  ;;  %v4933_v59 = vld [vmem:[#allocation2 + $0x240] sm:$0xff]  ;;  %v4935_v20 = vld [vmem:[#allocation2 + $0x268] sm:$0xff]  ;;  %v4937_v12 = vld [vmem:[#allocation2 + $0x238] sm:$0xff] }
 0x69c   :  { %5394 = vst [vmem:[#allocation10_spill] sm:$0xff] %v4933_v59  ;;  %5395 = vst [vmem:[#allocation11_spill] sm:$0xff] %v4935_v20 }
 0x69d   :  { %v1450_v21 = vmul.f32 %v1446_v49, %v1446_v49  ;;  %v1449_v48 = vmul.f32 %v1445_v46, %v1445_v46  ;;  %v1448_v60 = vmul.f32 %v1444_v19, %v1444_v19  ;;  %v1447_v1 = vmul.f32 %v1443_v17, %v1443_v17  ;;  %5396 = vst [vmem:[#allocation12_spill] sm:$0xff] %v4937_v12 }
 0x69f   :  { %4268 = vmatpush3.msra.mxu0 %v1450_v21 }
 0x6a0   :  { %4269 = vmatprep.subr.mxu0 %v5369_v4 }
 0x6a1   :  { %4270 = vmatpush3.msra.mxu0 %v1449_v48 }
 0x6a2   :  { %4271 = vmatprep.subr.mxu0 %v5369_v4 }
 0x6a3   :  { %4272 = vmatpush3.msra.mxu0 %v1448_v60 }
 0x6a4   :  { %4273 = vmatprep.subr.mxu0 %v5369_v4 }
 0x6a5   :  { %4274 = vmatpush3.msra.mxu0 %v1447_v1  ;;  %v4941_v1 = vld [vmem:[#allocation2 + $0x260] sm:$0xff] }
 0x6a6   :  { %4276 = vmatmul.mubr.msk.f32.vlgmr.msra.gmra.mxu0 %vm238_vm3, %v4912_v45  ;;  %5397 = vst [vmem:[#allocation13_spill] sm:$0xff] %v4941_v1 }
 0x766   :  { %v1517_v13 = vpop.f32.mrf.mxu0 }
 0x767   :  { %v1518_v57 = vadd.f32 1e-05, %v1517_v13  ;;  %v4943_v13 = vld [vmem:[#allocation2 + $0x230] sm:$0xff] }
 0x768   :  { %v4277_v14 = vpop.f32.mrf.mxu0  ;;  %5398 = vst [vmem:[#allocation14_spill] sm:$0xff] %v4943_v13 }
 0x769   :  { %4590 = vrsqrt.f32 %v1518_v57 }
 0x776   :  { %v4591_v58 = vpop.eup %4590 }
 0x777   :  { %v1525_v32 = vrot.slane %v4591_v58, %v4918_v15 }
 0x779   :  { %v1529_v8 = vmul.f32 %v1525_v32, %v1446_v49  ;;  %v1528_v0 = vmul.f32 %v1525_v32, %v1445_v46  ;;  %v1527_v18 = vmul.f32 %v1525_v32, %v1444_v19  ;;  %v1526_v60 = vmul.f32 %v1525_v32, %v1443_v17  ;;  %v4949_v46 = vld [vmem:[#allocation2 + $0x258] sm:$0xff]  ;;  %v4957_v17 = vld [vmem:[#allocation2 + $0x250] sm:$0xff] }
 0x77a   :  { %5399 = vst [vmem:[#allocation15_spill] sm:$0xff] %v4949_v46  ;;  %5400 = vst [vmem:[#allocation16_spill] sm:$0xff] %v4957_v17 }
 0x77b   :  { %v1533_v21 = vmul.f32 %v1529_v8, %v4931_v2  ;;  %v1532_v48 = vmul.f32 %v1528_v0, %v4933_v59  ;;  %v1531_v49 = vmul.f32 %v1527_v18, %v4937_v12  ;;  %v1530_v14 = vmul.f32 %v1526_v60, %v4943_v13  ;;  %v4969_v8 = vld [vmem:[#allocation2 + $0xa8] sm:$0xff]  ;;  %v4972_v0 = vld [vmem:[#allocation2 + $0xb0] sm:$0xff]  ;;  %v4980_v18 = vld [vmem:[#allocation2 + $0xb8] sm:$0xff] }
 0x77c   :  { %5401 = vst [vmem:[#allocation17_spill] sm:$0xff] %v4969_v8  ;;  %5402 = vst [vmem:[#allocation18_spill] sm:$0xff] %v4972_v0  ;;  %v4990_v60 = vld [vmem:[#allocation2 + $0xd0] sm:$0xff]  ;;  %v5010_v13 = vld [vmem:[#allocation2 + $0x2a0] sm:$0xff] }
 0x77d   :  { %v4946_v57 = vadd.f32 %v1533_v21, %v4935_v20  ;;  %v4953_v19 = vadd.f32 %v1532_v48, %v4941_v1  ;;  %v4961_v58 = vadd.f32 %v1531_v49, %v4949_v46  ;;  %v4966_v32 = vadd.f32 %v1530_v14, %v4957_v17  ;;  %5403 = vst [vmem:[#allocation19_spill] sm:$0xff] %v4980_v18  ;;  %v4982_v21 = vld [vmem:[#allocation2 + $0xc0] sm:$0xff]  ;;  %v4988_v48 = vld [vmem:[#allocation2 + $0xc8] sm:$0xff]  ;;  %v4996_v49 = vld [vmem:[#allocation2 + $0xd8] sm:$0xff] }
 0x77e   :  { %5404 = vst [vmem:[#allocation20_spill] sm:$0xff] %v4982_v21  ;;  %5405 = vst [vmem:[#allocation21_spill] sm:$0xff] %v4988_v48  ;;  %v5002_v14 = vld [vmem:[#allocation2 + $0xe0] sm:$0xff]  ;;  %v5006_v17 = vld [vmem:[#allocation2 + $0x2a8] sm:$0xff] }
 0x77f   :  { %4278 = vmatprep.subr.mxu1 %v4946_v57  ;;  %5406 = vst [vmem:[#allocation22_spill] sm:$0xff] %v4990_v60  ;;  %5407 = vst [vmem:[#allocation23_spill] sm:$0xff] %v4996_v49  ;;  %4314 = vmatprep.mubr.msk.f32.mxu0 %vm1675_vm6, %v5002_v14  ;;  %v5008_v46 = vld [vmem:[#allocation2 + $0x298] sm:$0xff]  ;;  %v5013_v1 = vld [vmem:[#allocation2 + $0x290] sm:$0xff] }
 0x780   :  { %4279 = vmatpush3.msra.mxu1 %v4946_v57  ;;  %5408 = vst [vmem:[#allocation24_spill] sm:$0xff] %v5002_v14  ;;  %5409 = vst [vmem:[#allocation25_spill] sm:$0xff] %v5006_v17  ;;  %v5017_v14 = vld [vmem:[#allocation2 + $0x288] sm:$0xff] }
 0x781   :  { %4280 = vmatprep.subr.mxu1 %v4953_v19 }
 0x782   :  { %4281 = vmatpush3.msra.mxu1 %v4953_v19 }
 0x783   :  { %4282 = vmatprep.subr.mxu1 %v4961_v58 }
 0x784   :  { %4283 = vmatpush3.msra.mxu1 %v4961_v58 }
 0x785   :  { %4284 = vmatprep.subr.mxu1 %v4966_v32 }
 0x786   :  { %4285 = vmatpush3.msra.mxu1 %v4966_v32 }
 0x787   :  { %4287 = vmatmul.mubr.msk.f32.vlgmr.msra.gmra.mxu1 %vm238_vm3, %v4969_v8  ;;  %4320 = vmatprep.subr.mxu1 %v5369_v4 }
 0x788   :  { %4289 = vmatprep.mubr.msk.f32.mxu1 %vm238_vm3, %v4972_v0 }
 0x78b   :  { %4290 = vmatmul.mubr.msk.f32.gmra.mxu1 %vm238_vm3, %v4980_v18 }
 0x78c   :  { %4292 = vmatprep.mubr.msk.f32.mxu1 %vm238_vm3, %v4982_v21 }
 0x78f   :  { %4293 = vmatmul.mubr.msk.f32.gmra.mxu1 %vm238_vm3, %v4988_v48 }
 0x790   :  { %4295 = vmatprep.mubr.msk.f32.mxu1 %vm238_vm3, %v4990_v60 }
 0x793   :  { %4296 = vmatmul.mubr.msk.f32.gmra.mxu1 %vm238_vm3, %v4996_v49 }
 0x794   :  { %4328 = vmatprep.mubr.msk.f32.mxu1 %vm4658_vm5, %v5369_v4 }
 0x847   :  { %v4288_v21 = vpop.f32.mrf.mxu1 }
 0x849   :  { %v1628_v18 = vpop.f32.mrf.mxu1 }
 0x84b   :  { %v4291_v48 = vpop.f32.mrf.mxu1 }
 0x84c   :  { %v1644_v3 = vadd.f32 %v4291_v48, %v5017_v14 }
 0x84d   :  { %v1638_v0 = vpop.f32.mrf.mxu1 }
 0x84f   :  { %v4294_v8 = vpop.f32.mrf.mxu1 }
 0x850   :  { %v1654_v20 = vadd.f32 %v4294_v8, %v5008_v46 }
 0x851   :  { %v1648_v60 = vpop.f32.mrf.mxu1 }
 0x852   :  { %v1649_v6 = vadd.f32 %v1648_v60, %v5013_v1  ;;  %v1670_v60 = vmax.f32 %v1644_v3, 0.0  ;;  %v5414_v3 = vmov 0.0  }
 0x853   :  { %v4297_v49 = vpop.f32.mrf.mxu1 }
 0x854   :  { %v1664_v4 = vadd.f32 %v4297_v49, %v5006_v17  ;;  %v1672_v49 = vmax.f32 %v1654_v20, 0.0  ;;  %v5023_v17 = vld [vmem:[#allocation2 + $0x278] sm:$0xff]  ;;  %v1671_v8 = vmax.f32 %v1649_v6, 0.0  ;;  %v5030_v6 = vld [vmem:[#allocation2 + $0xe8] sm:$0xff] }
 0x855   :  { %v1658_v12 = vpop.f32.mrf.mxu1  ;;  %5410 = vst [vmem:[#allocation26_spill] sm:$0xff] %v5023_v17  ;;  %5412 = vst [vmem:[#allocation28_spill] sm:$0xff] %v5030_v6 }
 0x856   :  { %v1674_v59 = vmax.f32 %v1664_v4, 0.0  ;;  %v1659_v2 = vadd.f32 %v1658_v12, %v5010_v13  ;;  %v1639_v4 = vadd.f32 %v1638_v0, %v5020_v53  ;;  %v5026_v12 = vld [vmem:[#allocation2 + $0x270] sm:$0xff] }
 0x857   :  { %5411 = vst [vmem:[#allocation27_spill] sm:$0xff] %v5026_v12  ;;  %v5032_v0 = vld [vmem:[#allocation2 + $0xf0] sm:$0xff] }
 0x858   :  { %v1673_v54 = vmax.f32 %v1659_v2, 0.0  ;;  %4298 = vmatprep.subr.mxu0 %v1674_v59  ;;  %v1634_v2 = vadd.f32 %v4288_v21, %v5023_v17  ;;  %v1669_v48 = vmax.f32 %v1639_v4, 0.0  ;;  %5413 = vst [vmem:[#allocation29_spill] sm:$0xff] %v5032_v0  ;;  %v5045_v4 = vld [vmem:[#allocation2 + $0x2c8] sm:$0xff] }
 0x859   :  { %4299 = vmatpush3.msra.mxu0 %v1674_v59  ;;  %v1629_v59 = vadd.f32 %v1628_v18, %v5026_v12  ;;  %v5039_v18 = vld [vmem:[#allocation2 + $0xf8] sm:$0xff] }
 0x85a   :  { %4300 = vmatprep.subr.mxu0 %v1673_v54  ;;  %v1668_v20 = vmax.f32 %v1634_v2, 0.0  ;;  %5415 = vst [vmem:[#allocation30_spill] sm:$0xff] %v5039_v18 }
 0x85b   :  { %4301 = vmatpush3.msra.mxu0 %v1673_v54  ;;  %v1667_v54 = vmax.f32 %v1629_v59, 0.0 }
 0x85c   :  { %4302 = vmatprep.subr.mxu0 %v1672_v49 }
 0x85d   :  { %4303 = vmatpush3.msra.mxu0 %v1672_v49 }
 0x85e   :  { %4304 = vmatprep.subr.mxu0 %v1671_v8 }
 0x85f   :  { %4305 = vmatpush3.msra.mxu0 %v1671_v8  ;;  %v5047_v8 = vld [vmem:[#allocation2 + $0x2b8] sm:$0xff] }
 0x860   :  { %4306 = vmatprep.subr.mxu0 %v1670_v60 }
 0x861   :  { %4307 = vmatpush3.msra.mxu0 %v1670_v60  ;;  %v5049_v60 = vld [vmem:[#allocation2 + $0x2c0] sm:$0xff] }
 0x862   :  { %4308 = vmatprep.subr.mxu0 %v1669_v48  ;;  %5416 = vst [vmem:[#allocation31_spill] sm:$0xff] %v5049_v60 }
 0x863   :  { %4309 = vmatpush3.msra.mxu0 %v1669_v48  ;;  %v5052_v48 = vld [vmem:[#allocation2 + $0x2b0] sm:$0xff] }
 0x864   :  { %4310 = vmatprep.subr.mxu0 %v1668_v20  ;;  %5417 = vst [vmem:[#allocation32_spill] sm:$0xff] %v5052_v48 }
 0x865   :  { %4311 = vmatpush3.msra.mxu0 %v1668_v20 }
 0x866   :  { %4312 = vmatprep.subr.mxu0 %v1667_v54 }
 0x867   :  { %4313 = vmatpush3.msra.mxu0 %v1667_v54 }
 0x868   :  { %4315 = vmatmul.mubr.msk.f32.vlgmr.msra.gmra.mxu0 %vm1675_vm6, %v5030_v6  ;;  %4331 = vmatprep.subr.mxu0 %v5414_v3 }
 0x869   :  { %4317 = vmatprep.mubr.msk.f32.mxu0 %vm1675_vm6, %v5032_v0 }
 0x86c   :  { %4318 = vmatmul.mubr.msk.f32.gmra.mxu0 %vm1675_vm6, %v5039_v18 }
 0x86d   :  { %4339 = vmatprep.mubr.msk.f32.mxu0 %vm4658_vm5, %v5414_v3 }
 0x928   :  { %v4316_v21 = vpop.f32.mrf.mxu0 }
 0x929   :  { %v1760_v54 = vadd.f32 %v4316_v21, %v5047_v8 }
 0x92a   :  { %v1754_v49 = vpop.f32.mrf.mxu0 }
 0x92b   :  { %v1755_v6 = vadd.f32 %v1754_v49, %v5052_v48  ;;  %v1774_v17 = vadd.f32 %v1760_v54, %v4961_v58 }
 0x92c   :  { %v4319_v2 = vpop.f32.mrf.mxu0 }
 0x92d   :  { %v1770_v59 = vadd.f32 %v4319_v2, %v5045_v4  ;;  %v1773_v2 = vadd.f32 %v1755_v6, %v4966_v32 }
 0x92e   :  { %v1764_v20 = vpop.f32.mrf.mxu0 }
 0x92f   :  { %v1776_v18 = vadd.f32 %v1770_v59, %v4946_v57  ;;  %v1765_v0 = vadd.f32 %v1764_v20, %v5049_v60  ;;  %v5087_v60 = vld [vmem:[#allocation2 + $0x2d0] sm:$0xff] }
 0x931   :  { %v1775_v12 = vadd.f32 %v1765_v0, %v4953_v19  ;;  %4321 = vmatpush3.msra.mxu1 %v1776_v18 }
 0x932   :  { %4322 = vmatprep.subr.mxu1 %v5414_v3 }
 0x933   :  { %4323 = vmatpush3.msra.mxu1 %v1775_v12 }
 0x934   :  { %4324 = vmatprep.subr.mxu1 %v5414_v3 }
 0x935   :  { %4325 = vmatpush3.msra.mxu1 %v1774_v17 }
 0x936   :  { %4326 = vmatprep.subr.mxu1 %v5414_v3 }
 0x937   :  { %4327 = vmatpush3.msra.mxu1 %v1773_v2 }
 0x938   :  { %4329 = vmatmul.mubr.msk.f32.vlgmr.msra.gmra.mxu1 %vm238_vm3, %v4912_v45 }
 0x939   :  { %4350 = vmatprep.mubr.msk.f32.mxu1 %vm238_vm3, %v4688_v9 }
 0x9f8   :  { %v1843_v57 = vpop.f32.mrf.mxu1 }
 0x9f9   :  { %v1850_v19 = vrot.slane %v1843_v57, %v4918_v15  ;;  %v5075_v57 = vld [vmem:[#allocation2 + $0x2e8] sm:$0xff] }
 0x9fa   :  { %v4330_v0 = vpop.f32.mrf.mxu1 }
 0x9fb   :  { %v1853_v58 = vsub.f32 %v1775_v12, %v1850_v19  ;;  %v1854_v21 = vsub.f32 %v1776_v18, %v1850_v19  ;;  %v1852_v49 = vsub.f32 %v1774_v17, %v1850_v19  ;;  %v1851_v20 = vsub.f32 %v1773_v2, %v1850_v19  ;;  %v5077_v19 = vld [vmem:[#allocation2 + $0x2e0] sm:$0xff] }
 0x9fd   :  { %v1858_v59 = vmul.f32 %v1854_v21, %v1854_v21  ;;  %v1857_v32 = vmul.f32 %v1853_v58, %v1853_v58  ;;  %v1856_v6 = vmul.f32 %v1852_v49, %v1852_v49  ;;  %v1855_v54 = vmul.f32 %v1851_v20, %v1851_v20 }
 0x9ff   :  { %4332 = vmatpush3.msra.mxu0 %v1858_v59 }
 0xa00   :  { %4333 = vmatprep.subr.mxu0 %v5414_v3 }
 0xa01   :  { %4334 = vmatpush3.msra.mxu0 %v1857_v32 }
 0xa02   :  { %4335 = vmatprep.subr.mxu0 %v5414_v3 }
 0xa03   :  { %4336 = vmatpush3.msra.mxu0 %v1856_v6  ;;  %v5079_v6 = vld [vmem:[#allocation2 + $0x308] sm:$0xff] }
 0xa04   :  { %4337 = vmatprep.subr.mxu0 %v5414_v3 }
 0xa05   :  { %4338 = vmatpush3.msra.mxu0 %v1855_v54  ;;  %v5081_v54 = vld [vmem:[#allocation2 + $0x2d8] sm:$0xff] }
 0xa06   :  { %4340 = vmatmul.mubr.msk.f32.vlgmr.msra.gmra.mxu0 %vm238_vm3, %v4912_v45 }
 0xac6   :  { %v1925_v9 = vpop.f32.mrf.mxu0 }
 0xac7   :  { %v1926_v17 = vadd.f32 1e-05, %v1925_v9 }
 0xac8   :  { %v4341_v12 = vpop.f32.mrf.mxu0 }
 0xac9   :  { %4592 = vrsqrt.f32 %v1926_v17  ;;  %v5085_v17 = vld [vmem:[#allocation2 + $0x300] sm:$0xff] }
 0xad6   :  { %v4593_v18 = vpop.eup %4592 }
 0xad7   :  { %v1933_v2 = vrot.slane %v4593_v18, %v4918_v15 }
 0xad9   :  { %v1937_v0 = vmul.f32 %v1933_v2, %v1854_v21  ;;  %v1936_v59 = vmul.f32 %v1933_v2, %v1853_v58  ;;  %v1935_v32 = vmul.f32 %v1933_v2, %v1852_v49  ;;  %v1934_v12 = vmul.f32 %v1933_v2, %v1851_v20  ;;  %v5093_v58 = vld [vmem:[#allocation2 + $0x2f8] sm:$0xff]  ;;  %v5101_v20 = vld [vmem:[#allocation2 + $0x2f0] sm:$0xff] }
 0xadb   :  { %v1941_v48 = vmul.f32 %v1937_v0, %v5075_v57  ;;  %v1940_v9 = vmul.f32 %v1936_v59, %v5077_v19  ;;  %v1939_v21 = vmul.f32 %v1935_v32, %v5081_v54  ;;  %v1938_v0 = vmul.f32 %v1934_v12, %v5087_v60 }
 0xadd   :  { %v5090_v18 = vadd.f32 %v1941_v48, %v5079_v6  ;;  %v5097_v49 = vadd.f32 %v1940_v9, %v5085_v17  ;;  %v5105_v48 = vadd.f32 %v1939_v21, %v5093_v58  ;;  %v5110_v2 = vadd.f32 %v1938_v0, %v5101_v20 }
 0xadf   :  { %4342 = vmatprep.subr.mxu1 %v5090_v18 }
 0xae0   :  { %4343 = vmatpush3.msra.mxu1 %v5090_v18 }
 0xae1   :  { %4344 = vmatprep.subr.mxu1 %v5097_v49 }
 0xae2   :  { %4345 = vmatpush3.msra.mxu1 %v5097_v49 }
 0xae3   :  { %4346 = vmatprep.subr.mxu1 %v5105_v48 }
 0xae4   :  { %4347 = vmatpush3.msra.mxu1 %v5105_v48 }
 0xae5   :  { %4348 = vmatprep.subr.mxu1 %v5110_v2 }
 0xae6   :  { %4349 = vmatpush3.msra.mxu1 %v5110_v2 }
 0xae7   :  { %4351 = vmatmul.mubr.msk.f32.vlgmr.msra.gmra.mxu1 %vm238_vm3, %v4706_v22  ;;  %4395 = vmatprep.subr.mxu1 %v5414_v3 }
 0xae8   :  { %4353 = vmatprep.mubr.msk.f32.mxu1 %vm238_vm3, %v4709_v23 }
 0xaeb   :  { %4354 = vmatmul.mubr.msk.f32.gmra.mxu1 %vm238_vm3, %v4716_v24 }
 0xaec   :  { %4356 = vmatprep.mubr.msk.f32.mxu1 %vm238_vm3, %v4718_v25 }
 0xaef   :  { %4357 = vmatmul.mubr.msk.f32.gmra.mxu1 %vm238_vm3, %v4724_v26 }
 0xaf0   :  { %4359 = vmatprep.mubr.msk.f32.mxu1 %vm238_vm3, %v4726_v27 }
 0xaf3   :  { %4360 = vmatmul.mubr.msk.f32.gmra.mxu1 %vm238_vm3, %v4732_v28 }
 0xaf4   :  { %4362 = vmatprep.mubr.msk.f32.mxu1 %vm238_vm3, %v4768_v61 }
 0xaf7   :  { %4363 = vmatmul.mubr.msk.f32.gmra.mxu1 %vm238_vm3, %v4770_v62 }
 0xaf8   :  { %4365 = vmatprep.mubr.msk.f32.mxu1 %vm238_vm3, %v4789_v16 }
 0xafb   :  { %4366 = vmatmul.mubr.msk.f32.gmra.mxu1 %vm238_vm3, %v4795_v29 }
 0xafc   :  { %4399 = vmatprep.mubr.msk.f32.mxu1 %vm4658_vm5, %v5414_v3 }
 0xba7   :  { %v4352_v22 = vpop.f32.mrf.mxu1 }
 0xba8   :  { %v2018_v23 = vadd.f32 %v4352_v22, %v4741_v35 }
 0xba9   :  { %v2012_v24 = vpop.f32.mrf.mxu1 }
 0xbaa   :  { %v2013_v25 = vadd.f32 %v2012_v24, %v4736_v30  ;;  %2184 = vxpose.xlu1.b32.start.end [1/1] (short) (narrow) %v2018_v23, 16 }
 0xbab   :  { %v4355_v26 = vpop.f32.mrf.mxu1 }
 0xbac   :  { %2071 = vxpose.xlu0.b32.start.end [1/1] (short) (narrow) %v2013_v25, 16  ;;  %v2028_v59 = vadd.f32 %v4355_v26, %v4749_v42 }
 0xbad   :  { %v2022_v27 = vpop.f32.mrf.mxu1 }
 0xbae   :  { %v2023_v28 = vadd.f32 %v2022_v27, %v4739_v34 }
 0xbaf   :  { %v4358_v61 = vpop.f32.mrf.mxu1 }
 0xbb0   :  { %v2038_v16 = vadd.f32 %v4358_v61, %v4745_v39 }
 0xbb1   :  { %2297 = vxpose.xlu0.b32.start.end [1/1] (short) (narrow) %v2023_v28, 16  ;;  %v2032_v62 = vpop.f32.mrf.mxu1 }
 0xbb2   :  { %v2033_v29 = vadd.f32 %v2032_v62, %v4747_v41 }
 0xbb3   :  { %v4361_v30 = vpop.f32.mrf.mxu1 }
 0xbb4   :  { %4368 = vmatprep.subr.mxu0 %v2033_v29  ;;  %v2048_v41 = vadd.f32 %v4361_v30, %v4759_v55 }
 0xbb5   :  { %4369 = vmatpush3.msra.mxu0 %v2033_v29  ;;  %v2042_v35 = vpop.f32.mrf.mxu1 }
 0xbb6   :  { %2410 = vxpose.xlu0.b32.start.end [1/1] (short) (narrow) %v2028_v59, 16  ;;  %4373 = vmatprep.subr.mxu0 %v2038_v16  ;;  %v2043_v34 = vadd.f32 %v2042_v35, %v4754_v50 }
 0xc26   :  { %v2200_v9 = vpop.trf.xlu1 }
 0xc28   :  { %v2087_v32 = vpop.trf.xlu0 }
 0xc29   :  { %4370 = vmatprep.mubr.msk.f32.mxu0 %vm432_vm4, %v2087_v32 }
 0xc2a   :  { %v2201_v39 = vpop.trf.xlu1 }
 0xc2c   :  { %v2088_v12 = vpop.trf.xlu0 }
 0xc2d   :  { %4371 = vmatmul.mubr.msk.f32.vlgmr.msra.gmra.mxu0 %vm432_vm4, %v2088_v12 }
 0xc2e   :  { %4374 = vmatpush3.msra.mxu0 %v2038_v16  ;;  %4375 = vmatprep.mubr.msk.f32.mxu0 %vm432_vm4, %v2200_v9 }
 0xc2f   :  { %4378 = vmatprep.subr.mxu0 %v2043_v34 }
 0xc30   :  { %v2313_v42 = vpop.trf.xlu0 }
 0xc31   :  { %4376 = vmatmul.mubr.msk.f32.vlgmr.msra.gmra.mxu0 %vm432_vm4, %v2201_v39 }
 0xc32   :  { %4379 = vmatpush3.msra.mxu0 %v2043_v34  ;;  %4380 = vmatprep.mubr.msk.f32.mxu0 %vm432_vm4, %v2313_v42 }
 0xc33   :  { %4383 = vmatprep.subr.mxu0 %v2048_v41 }
 0xc34   :  { %v2314_v21 = vpop.trf.xlu0 }
 0xc35   :  { %4381 = vmatmul.mubr.msk.f32.vlgmr.msra.gmra.mxu0 %vm432_vm4, %v2314_v21 }
 0xc36   :  { %4384 = vmatpush3.msra.mxu0 %v2048_v41 }
 0xc37   :  { %4388 = vmatprep.subr.mxu0 %v5414_v3 }
 0xc38   :  { %v2426_v50 = vpop.trf.xlu0 }
 0xc39   :  { %4385 = vmatprep.mubr.msk.f32.mxu0 %vm432_vm4, %v2426_v50 }
 0xc3c   :  { %v2427_v0 = vpop.trf.xlu0 }
 0xc3d   :  { %4386 = vmatmul.mubr.msk.f32.vlgmr.msra.gmra.mxu0 %vm432_vm4, %v2427_v0 }
 0xc3e   :  { %4392 = vmatprep.mubr.msk.f32.mxu0 %vm4658_vm5, %v5414_v3 }
 0xced   :  { %v4372_v55 = vpop.f32.mrf.mxu0 }
 0xcee   :  { %v2524_v22 = vadd.f32 %v4372_v55, %v4776_v63 }
 0xcef   :  { %v2175_v23 = vpop.f32.mrf.mxu0 }
 0xcf0   :  { %v2534_v24 = vsel %vm140_vm0, %v2524_v22, -inf  ;;  %v2523_v16 = vadd.f32 %v2175_v23, %v4785_v10 }
 0xcf1   :  { %2535 = vmax.xlane.f32.xlu0 %v2534_v24  ;;  %v4377_v25 = vpop.f32.mrf.mxu0 }
 0xcf2   :  { %v2526_v26 = vadd.f32 %v4377_v25, %v4780_v5  ;;  %v2531_v30 = vsel %vm140_vm0, %v2523_v16, -inf }
 0xcf3   :  { %v2288_v27 = vpop.f32.mrf.mxu0 }
 0xcf4   :  { %v2540_v28 = vsel %vm140_vm0, %v2526_v26, -inf  ;;  %v2525_v61 = vadd.f32 %v2288_v27, %v4782_v7 }
 0xcf5   :  { %2541 = vmax.xlane.f32.xlu1 %v2540_v28  ;;  %v4382_v62 = vpop.f32.mrf.mxu0 }
 0xcf6   :  { %v2537_v29 = vsel %vm140_vm0, %v2525_v61, -inf  ;;  %v2528_v59 = vadd.f32 %v4382_v62, %v4797_v31 }
 0xcf7   :  { %v2401_v63 = vpop.f32.mrf.mxu0 }
 0xcf8   :  { %v2527_v9 = vadd.f32 %v2401_v63, %v4808_v44  ;;  %v2546_v7 = vsel %vm140_vm0, %v2528_v59, -inf }
 0xcf9   :  { %2538 = vmax.xlane.f32.xlu1 %v2537_v29 }
 0xcfa   :  { %v2543_v12 = vsel %vm140_vm0, %v2527_v9, -inf }
 0xcfd   :  { %2532 = vmax.xlane.f32.xlu1 %v2531_v30  ;;  %v4387_v35 = vpop.f32.mrf.mxu0 }
 0xcfe   :  { %v2530_v5 = vadd.f32 %v4387_v35, %v4799_v33 }
 0xcff   :  { %v2514_v32 = vpop.f32.mrf.mxu0 }
 0xd00   :  { %v2552_v34 = vsel %vm140_vm0, %v2530_v5, -inf  ;;  %v2529_v10 = vadd.f32 %v2514_v32, %v4803_v37 }
 0xd01   :  { %2547 = vmax.xlane.f32.xlu1 %v2546_v7  ;;  %2553 = vmax.xlane.f32.xlu0 %v2552_v34 }
 0xd02   :  { %v2549_v31 = vsel %vm140_vm0, %v2529_v10, -inf }
 0xd05   :  { %2544 = vmax.xlane.f32.xlu1 %v2543_v12  ;;  %2550 = vmax.xlane.f32.xlu0 %v2549_v31 }
 0xd7a   :  { %v2536_v39 = vpop.xlane.xlu0 %2535 }
 0xd7b   :  { %v2556_v41 = vsub.f32 %v2524_v22, %v2536_v39 }
 0xd7d   :  { %v2565_v33 = vmul.f32 1.442695, %v2556_v41 }
 0xd7e   :  { %v2542_v42 = vpop.xlane.xlu1 %2541 }
 0xd7f   :  { %4594 = vpow2.f32 %v2565_v33  ;;  %v2558_v44 = vsub.f32 %v2526_v26, %v2542_v42 }
 0xd81   :  { %v2569_v21 = vmul.f32 1.442695, %v2558_v44 }
 0xd82   :  { %v2539_v50 = vpop.xlane.xlu1 %2538 }
 0xd83   :  { %4596 = vpow2.f32 %v2569_v21  ;;  %v2557_v0 = vsub.f32 %v2525_v61, %v2539_v50 }
 0xd85   :  { %v2567_v55 = vmul.f32 1.442695, %v2557_v0 }
 0xd86   :  { %v2533_v37 = vpop.xlane.xlu1 %2532 }
 0xd87   :  { %4598 = vpow2.f32 %v2567_v55  ;;  %v2555_v23 = vsub.f32 %v2523_v16, %v2533_v37 }
 0xd89   :  { %v2563_v24 = vmul.f32 1.442695, %v2555_v23 }
 0xd8a   :  { %v2548_v25 = vpop.xlane.xlu1 %2547  ;;  %v2554_v27 = vpop.xlane.xlu0 %2553 }
 0xd8b   :  { %4600 = vpow2.f32 %v2563_v24  ;;  %v2560_v28 = vsub.f32 %v2528_v59, %v2548_v25  ;;  %v2562_v62 = vsub.f32 %v2530_v5, %v2554_v27 }
 0xd8c   :  { %v4595_v29 = vpop.eup %4594 }
 0xd8d   :  { %v2573_v22 = vmul.f32 1.442695, %v2560_v28  ;;  %v2577_v63 = vmul.f32 1.442695, %v2562_v62  ;;  %v2582_v30 = vsel %vm140_vm0, %v4595_v29, 0.0 }
 0xd8e   :  { %v2545_v26 = vpop.xlane.xlu1 %2544  ;;  %2583 = vadd.xlane.f32.xlu1 %v2582_v30  ;;  %v2551_v35 = vpop.xlane.xlu0 %2550 }
 0xd8f   :  { %4602 = vpow2.f32 %v2573_v22  ;;  %v2559_v61 = vsub.f32 %v2527_v9, %v2545_v26  ;;  %v2561_v32 = vsub.f32 %v2529_v10, %v2551_v35  ;;  %v4364_v26 = vpop.f32.mrf.mxu1 }
 0xd90   :  { %v4597_v7 = vpop.eup %4596  ;;  %4604 = vpow2.f32 %v2577_v63 }
 0xd91   :  { %v2571_v16 = vmul.f32 1.442695, %v2559_v61  ;;  %v2575_v34 = vmul.f32 1.442695, %v2561_v32  ;;  %v2588_v12 = vsel %vm140_vm0, %v4597_v7, 0.0  ;;  %v2058_v61 = vadd.f32 %v4364_v26, %v4839_v51  ;;  %v2052_v32 = vpop.f32.mrf.mxu1 }
 0xd92   :  { %2589 = vadd.xlane.f32.xlu0 %v2588_v12 }
 0xd93   :  { %4606 = vpow2.f32 %v2571_v16  ;;  %v4367_v12 = vpop.f32.mrf.mxu1 }
 0xd94   :  { %v4599_v59 = vpop.eup %4598  ;;  %4608 = vpow2.f32 %v2575_v34  ;;  %v2053_v34 = vadd.f32 %v2052_v32, %v4842_v38 }
 0xd95   :  { %v2585_v5 = vsel %vm140_vm0, %v4599_v59, 0.0 }
 0xd96   :  { %2586 = vadd.xlane.f32.xlu0 %v2585_v5 }
 0xd98   :  { %v4601_v31 = vpop.eup %4600 }
 0xd99   :  { %v2579_v39 = vsel %vm140_vm0, %v4601_v31, 0.0 }
 0xd9a   :  { %2580 = vadd.xlane.f32.xlu1 %v2579_v39 }
 0xd9c   :  { %v4603_v41 = vpop.eup %4602 }
 0xd9d   :  { %v4605_v9 = vpop.eup %4604  ;;  %v2594_v10 = vsel %vm140_vm0, %v4603_v41, 0.0 }
 0xd9e   :  { %2595 = vadd.xlane.f32.xlu1 %v2594_v10  ;;  %v2600_v33 = vsel %vm140_vm0, %v4605_v9, 0.0 }
 0xd9f   :  { %2601 = vadd.xlane.f32.xlu0 %v2600_v33 }
 0xda0   :  { %v4607_v42 = vpop.eup %4606 }
 0xda1   :  { %v4609_v44 = vpop.eup %4608  ;;  %v2591_v21 = vsel %vm140_vm0, %v4607_v42, 0.0 }
 0xda2   :  { %2592 = vadd.xlane.f32.xlu1 %v2591_v21  ;;  %v2597_v50 = vsel %vm140_vm0, %v4609_v44, 0.0 }
 0xda3   :  { %2598 = vadd.xlane.f32.xlu0 %v2597_v50 }
 0xe17   :  { %v2584_v0 = vpop.xlane.xlu1 %2583 }
 0xe18   :  { %4610 = vrcp.f32 %v2584_v0 }
 0xe1b   :  { %v2590_v55 = vpop.xlane.xlu0 %2589 }
 0xe1c   :  { %4612 = vrcp.f32 %v2590_v55 }
 0xe1f   :  { %v2587_v37 = vpop.xlane.xlu0 %2586 }
 0xe20   :  { %4614 = vrcp.f32 %v2587_v37 }
 0xe23   :  { %v2581_v23 = vpop.xlane.xlu1 %2580 }
 0xe24   :  { %4616 = vrcp.f32 %v2581_v23 }
 0xe25   :  { %v4611_v24 = vpop.eup %4610 }
 0xe26   :  { %v2612_v25 = vmul.f32 %v4611_v24, %v4595_v29 }
 0xe27   :  { %v2596_v27 = vpop.xlane.xlu1 %2595 }
 0xe28   :  { %4618 = vrcp.f32 %v2596_v27  ;;  %v2602_v28 = vpop.xlane.xlu0 %2601  ;;  %4389 = vmatpush3.xpose.msk.msra.mxu0 %vm140_vm0, %v2612_v25 }
 0xe29   :  { %v4613_v62 = vpop.eup %4612  ;;  %4620 = vrcp.f32 %v2602_v28  ;;  %4390 = vmatprep.subr.mxu0 %v5414_v3  ;;  %v5418_v28 = vld [vmem:[#allocation5_spill] sm:$0xff] }
 0xe2a   :  { %v2614_v22 = vmul.f32 %v4613_v62, %v4597_v7 }
 0xe2b   :  { %v2593_v63 = vpop.xlane.xlu1 %2592 }
 0xe2c   :  { %4622 = vrcp.f32 %v2593_v63  ;;  %v2599_v30 = vpop.xlane.xlu0 %2598  ;;  %4396 = vmatpush3.xpose.msk.msra.mxu1 %vm140_vm0, %v2614_v22  ;;  %v5419_v22 = vld [vmem:[#allocation6_spill] sm:$0xff] }
 0xe2d   :  { %v4615_v35 = vpop.eup %4614  ;;  %4624 = vrcp.f32 %v2599_v30  ;;  %4397 = vmatprep.subr.mxu1 %v5414_v3  ;;  %v5420_v30 = vld [vmem:[#allocation7_spill] sm:$0xff] }
 0xe2e   :  { %v2613_v29 = vmul.f32 %v4615_v35, %v4599_v59 }
 0xe30   :  { %4398 = vmatpush3.xpose.msk.msra.mxu1 %vm140_vm0, %v2613_v29 }
 0xe31   :  { %v4617_v16 = vpop.eup %4616  ;;  %4409 = vmatprep.subr.mxu1 %v5414_v3 }
 0xe32   :  { %v2611_v7 = vmul.f32 %v4617_v16, %v4601_v31  ;;  %v2062_v31 = vpop.f32.mrf.mxu1 }
 0xe33   :  { %4400 = vmatmul.mubr.msk.f32.vlgmr.msra.gmra.mxu1 %vm140_vm0, %v2058_v61 }
 0xe34   :  { %4391 = vmatpush3.xpose.msk.msra.mxu0 %vm140_vm0, %v2611_v7  ;;  %4413 = vmatprep.mubr.msk.f32.mxu1 %vm4658_vm5, %v5414_v3 }
 0xe35   :  { %v4619_v59 = vpop.eup %4618  ;;  %4402 = vmatprep.subr.mxu0 %v5414_v3 }
 0xe36   :  { %v4621_v51 = vpop.eup %4620  ;;  %v2616_v5 = vmul.f32 %v4619_v59, %v4603_v41  ;;  %v2063_v41 = vadd.f32 %v2062_v31, %v4865_v36  ;;  %v5422_v59 = vld [vmem:[#allocation24_spill] sm:$0xff] }
 0xe37   :  { %4393 = vmatmul.mubr.msk.f32.vlgmr.msra.gmra.mxu0 %vm140_vm0, %v2053_v34  ;;  %v2618_v39 = vmul.f32 %v4621_v51, %v4605_v9  ;;  %v2068_v9 = vadd.f32 %v4367_v12, %v4852_v11 }
 0xe38   :  { %4403 = vmatpush3.xpose.msk.msra.mxu0 %vm140_vm0, %v2616_v5  ;;  %4406 = vmatprep.mubr.msk.f32.mxu0 %vm4658_vm5, %v5414_v3 }
 0xe39   :  { %v4623_v38 = vpop.eup %4622  ;;  %4410 = vmatpush3.xpose.msk.msra.mxu1 %vm140_vm0, %v2618_v39  ;;  %4404 = vmatprep.subr.mxu0 %v5414_v3 }
 0xe3a   :  { %v4625_v10 = vpop.eup %4624  ;;  %4411 = vmatprep.subr.mxu1 %v5414_v3  ;;  %v2615_v33 = vmul.f32 %v4623_v38, %v4607_v42 }
 0xe3b   :  { %v2617_v21 = vmul.f32 %v4625_v10, %v4609_v44 }
 0xe3c   :  { %4405 = vmatpush3.xpose.msk.msra.mxu0 %vm140_vm0, %v2615_v33 }
 0xe3d   :  { %4412 = vmatpush3.xpose.msk.msra.mxu1 %vm140_vm0, %v2617_v21 }
 0xe3e   :  { %4430 = vmatprep.subr.mxu1 %v5414_v3 }
 0xe3f   :  { %4407 = vmatmul.mubr.msk.f32.vlgmr.msra.gmra.mxu0 %vm140_vm0, %v2063_v41  ;;  %v5423_v41 = vld [vmem:[#allocation9_spill] sm:$0xff] }
 0xe40   :  { %4414 = vmatmul.mubr.msk.f32.vlgmr.msra.gmra.mxu1 %vm140_vm0, %v2068_v9  ;;  %4424 = vmatprep.mubr.msk.f32.mxu0 %vm238_vm3, %v4875_v43 }
 0xe41   :  { %4438 = vmatprep.mubr.msk.f32.mxu1 %vm4658_vm5, %v5414_v3 }
 0xef3   :  { %v2773_v42 = vpop.f32.mrf.mxu1 }
 0xef5   :  { %v4401_v36 = vpop.f32.mrf.mxu1 }
 0xef7   :  { %v2694_v44 = vpop.f32.mrf.mxu0 }
 0xef9   :  { %v4394_v11 = vpop.f32.mrf.mxu0 }
 0xefa   :  { %v5425_v11 = vld [vmem:[#allocation11_spill] sm:$0xff] }
 0xeff   :  { %v2852_v50 = vpop.f32.mrf.mxu0 }
 0xf00   :  { %v2931_v0 = vpop.f32.mrf.mxu1 }
 0xf01   :  { %4416 = vmatprep.subr.mxu0 %v2931_v0  ;;  %v4408_v55 = vpop.f32.mrf.mxu0 }
 0xf02   :  { %4417 = vmatpush3.msra.mxu0 %v2931_v0  ;;  %v4415_v37 = vpop.f32.mrf.mxu1  ;;  %v5427_v55 = vld [vmem:[#allocation13_spill] sm:$0xff] }
 0xf03   :  { %4418 = vmatprep.subr.mxu0 %v2852_v50 }
 0xf04   :  { %4419 = vmatpush3.msra.mxu0 %v2852_v50  ;;  %v5426_v50 = vld [vmem:[#allocation12_spill] sm:$0xff] }
 0xf05   :  { %4420 = vmatprep.subr.mxu0 %v2773_v42 }
 0xf06   :  { %4421 = vmatpush3.msra.mxu0 %v2773_v42  ;;  %v5424_v42 = vld [vmem:[#allocation10_spill] sm:$0xff] }
 0xf07   :  { %4422 = vmatprep.subr.mxu0 %v2694_v44 }
 0xf08   :  { %4423 = vmatpush3.msra.mxu0 %v2694_v44 }
 0xf09   :  { %4425 = vmatmul.mubr.msk.f32.vlgmr.msra.gmra.mxu0 %vm238_vm3, %v4879_v40  ;;  %4441 = vmatprep.subr.mxu0 %v5414_v3 }
 0xf0a   :  { %4427 = vmatprep.mubr.msk.f32.mxu0 %vm238_vm3, %v4881_v56 }
 0xf0d   :  { %4428 = vmatmul.mubr.msk.f32.gmra.mxu0 %vm238_vm3, %v4888_v47 }
 0xf0e   :  { %4449 = vmatprep.mubr.msk.f32.mxu0 %vm4658_vm5, %v5414_v3 }
 0xfc9   :  { %v4426_v43 = vpop.f32.mrf.mxu0 }
 0xfca   :  { %v3007_v62 = vadd.f32 %v4426_v43, %v5418_v28  ;;  %v5428_v43 = vld [vmem:[#allocation14_spill] sm:$0xff] }
 0xfcb   :  { %v3001_v23 = vpop.f32.mrf.mxu0 }
 0xfcc   :  { %v3002_v56 = vadd.f32 %v3001_v23, %v5420_v30  ;;  %v3021_v47 = vadd.f32 %v3007_v62, %v5105_v48  ;;  %v5431_v62 = vld [vmem:[#allocation17_spill] sm:$0xff] }
 0xfcd   :  { %v4429_v24 = vpop.f32.mrf.mxu0  ;;  %v5435_v30 = vld [vmem:[#allocation21_spill] sm:$0xff] }
 0xfce   :  { %v3017_v25 = vadd.f32 %v4429_v24, %v4894_v52  ;;  %v3020_v52 = vadd.f32 %v3002_v56, %v5110_v2  ;;  %v5429_v24 = vld [vmem:[#allocation15_spill] sm:$0xff]  ;;  %v5436_v56 = vld [vmem:[#allocation22_spill] sm:$0xff] }
 0xfcf   :  { %v3011_v27 = vpop.f32.mrf.mxu0 }
 0xfd0   :  { %v3023_v40 = vadd.f32 %v3017_v25, %v5090_v18  ;;  %v3012_v63 = vadd.f32 %v3011_v27, %v5419_v22  ;;  %v5421_v18 = vld [vmem:[#allocation8_spill] sm:$0xff]  ;;  %v5433_v22 = vld [vmem:[#allocation19_spill] sm:$0xff] }
 0xfd1   :  { %v5430_v27 = vld [vmem:[#allocation16_spill] sm:$0xff] }
 0xfd2   :  { %v3022_v26 = vadd.f32 %v3012_v63, %v5097_v49  ;;  %4431 = vmatpush3.msra.mxu1 %v3023_v40  ;;  %v5434_v63 = vld [vmem:[#allocation20_spill] sm:$0xff] }
 0xfd3   :  { %4432 = vmatprep.subr.mxu1 %v5414_v3 }
 0xfd4   :  { %4433 = vmatpush3.msra.mxu1 %v3022_v26 }
 0xfd5   :  { %4434 = vmatprep.subr.mxu1 %v5414_v3 }
 0xfd6   :  { %4435 = vmatpush3.msra.mxu1 %v3021_v47 }
 0xfd7   :  { %4436 = vmatprep.subr.mxu1 %v5414_v3 }
 0xfd8   :  { %4437 = vmatpush3.msra.mxu1 %v3020_v52 }
 0xfd9   :  { %4439 = vmatmul.mubr.msk.f32.vlgmr.msra.gmra.mxu1 %vm238_vm3, %v4912_v45 }
 0xfda   :  { %4460 = vmatprep.mubr.msk.f32.mxu1 %vm238_vm3, %v5421_v18 }
0x1099   :  { %v3090_v49 = vpop.f32.mrf.mxu1 }
0x109a   :  { %v3097_v35 = vrot.slane %v3090_v49, %v4918_v15 }
0x109b   :  { %v4440_v29 = vpop.f32.mrf.mxu1 }
0x109c   :  { %v3100_v48 = vsub.f32 %v3022_v26, %v3097_v35  ;;  %v3101_v61 = vsub.f32 %v3023_v40, %v3097_v35  ;;  %v3099_v32 = vsub.f32 %v3021_v47, %v3097_v35  ;;  %v3098_v7 = vsub.f32 %v3020_v52, %v3097_v35  ;;  %v5432_v40 = vld [vmem:[#allocation18_spill] sm:$0xff]  ;;  %v5437_v26 = vld [vmem:[#allocation23_spill] sm:$0xff] }
0x109e   :  { %v3105_v16 = vmul.f32 %v3101_v61, %v3101_v61  ;;  %v3104_v2 = vmul.f32 %v3100_v48, %v3100_v48  ;;  %v3103_v34 = vmul.f32 %v3099_v32, %v3099_v32  ;;  %v3102_v12 = vmul.f32 %v3098_v7, %v3098_v7 }
0x10a0   :  { %4442 = vmatpush3.msra.mxu0 %v3105_v16 }
0x10a1   :  { %4443 = vmatprep.subr.mxu0 %v5414_v3 }
0x10a2   :  { %4444 = vmatpush3.msra.mxu0 %v3104_v2 }
0x10a3   :  { %4445 = vmatprep.subr.mxu0 %v5414_v3 }
0x10a4   :  { %4446 = vmatpush3.msra.mxu0 %v3103_v34 }
0x10a5   :  { %4447 = vmatprep.subr.mxu0 %v5414_v3 }
0x10a6   :  { %4448 = vmatpush3.msra.mxu0 %v3102_v12 }
0x10a7   :  { %4450 = vmatmul.mubr.msk.f32.vlgmr.msra.gmra.mxu0 %vm238_vm3, %v4912_v45 }
0x10a8   :  { %4488 = vmatprep.mubr.msk.f32.mxu0 %vm1675_vm6, %v5422_v59 }
0x1167   :  { %v3172_v51 = vpop.f32.mrf.mxu0 }
0x1168   :  { %v3173_v5 = vadd.f32 1e-05, %v3172_v51 }
0x1169   :  { %v4451_v39 = vpop.f32.mrf.mxu0 }
0x116a   :  { %4626 = vrsqrt.f32 %v3173_v5 }
0x1177   :  { %v4627_v31 = vpop.eup %4626 }
0x1178   :  { %v3180_v38 = vrot.slane %v4627_v31, %v4918_v15 }
0x117a   :  { %v3184_v10 = vmul.f32 %v3180_v38, %v3101_v61  ;;  %v3183_v33 = vmul.f32 %v3180_v38, %v3100_v48  ;;  %v3182_v21 = vmul.f32 %v3180_v38, %v3099_v32  ;;  %v3181_v44 = vmul.f32 %v3180_v38, %v3098_v7  ;;  %v5438_v61 = vld [vmem:[#allocation25_spill] sm:$0xff]  ;;  %v5439_v38 = vld [vmem:[#allocation26_spill] sm:$0xff] }
0x117c   :  { %v3188_v9 = vmul.f32 %v3184_v10, %v5423_v41  ;;  %v3187_v36 = vmul.f32 %v3183_v33, %v5424_v42  ;;  %v3186_v0 = vmul.f32 %v3182_v21, %v5426_v50  ;;  %v3185_v23 = vmul.f32 %v3181_v44, %v5428_v43  ;;  %v5442_v41 = vld [vmem:[#allocation29_spill] sm:$0xff]  ;;  %v5444_v43 = vld [vmem:[#allocation31_spill] sm:$0xff] }
0x117e   :  { %v5250_v45 = vadd.f32 %v3188_v9, %v5425_v11  ;;  %v5255_v37 = vadd.f32 %v3187_v36, %v5427_v55  ;;  %v5261_v25 = vadd.f32 %v3186_v0, %v5429_v24  ;;  %v5266_v28 = vadd.f32 %v3185_v23, %v5430_v27  ;;  %v5443_v9 = vld [vmem:[#allocation30_spill] sm:$0xff]  ;;  %v5445_v24 = vld [vmem:[#allocation32_spill] sm:$0xff] }
0x1180   :  { %4452 = vmatprep.subr.mxu1 %v5250_v45 }
0x1181   :  { %4453 = vmatpush3.msra.mxu1 %v5250_v45 }
0x1182   :  { %4454 = vmatprep.subr.mxu1 %v5255_v37 }
0x1183   :  { %4455 = vmatpush3.msra.mxu1 %v5255_v37 }
0x1184   :  { %4456 = vmatprep.subr.mxu1 %v5261_v25 }
0x1185   :  { %4457 = vmatpush3.msra.mxu1 %v5261_v25 }
0x1186   :  { %4458 = vmatprep.subr.mxu1 %v5266_v28 }
0x1187   :  { %4459 = vmatpush3.msra.mxu1 %v5266_v28 }
0x1188   :  { %4461 = vmatmul.mubr.msk.f32.vlgmr.msra.gmra.mxu1 %vm238_vm3, %v5431_v62  ;;  %4494 = vmatprep.subr.mxu1 %v5414_v3 }
0x1189   :  { %4463 = vmatprep.mubr.msk.f32.mxu1 %vm238_vm3, %v5432_v40 }
0x118c   :  { %4464 = vmatmul.mubr.msk.f32.gmra.mxu1 %vm238_vm3, %v5433_v22 }
0x118d   :  { %4466 = vmatprep.mubr.msk.f32.mxu1 %vm238_vm3, %v5434_v63 }
0x1190   :  { %4467 = vmatmul.mubr.msk.f32.gmra.mxu1 %vm238_vm3, %v5435_v30 }
0x1191   :  { %4469 = vmatprep.mubr.msk.f32.mxu1 %vm238_vm3, %v5436_v56 }
0x1194   :  { %4470 = vmatmul.mubr.msk.f32.gmra.mxu1 %vm238_vm3, %v5437_v26 }
0x1195   :  { %4502 = vmatprep.mubr.msk.f32.mxu1 %vm4658_vm5, %v5414_v3 }
0x1248   :  { %v4462_v47 = vpop.f32.mrf.mxu1 }
0x124a   :  { %v3259_v52 = vpop.f32.mrf.mxu1 }
0x124c   :  { %v4465_v18 = vpop.f32.mrf.mxu1 }
0x124d   :  { %v3275_v51 = vadd.f32 %v4465_v18, %v5017_v14  ;;  %v57_v18 = vld [vmem:[#allocation2 + $0x100] sm:$0xff] }
0x124e   :  { %v3269_v49 = vpop.f32.mrf.mxu1 }
0x124f   :  { %v3270_v39 = vadd.f32 %v3269_v49, %v5020_v53  ;;  %v3301_v10 = vmax.f32 %v3275_v51, 0.0  ;;  %v5441_v53 = vld [vmem:[#allocation28_spill] sm:$0xff] }
0x1250   :  { %v4468_v35 = vpop.f32.mrf.mxu1 }
0x1251   :  { %v3285_v7 = vadd.f32 %v4468_v35, %v5008_v46  ;;  %v3265_v46 = vadd.f32 %v4462_v47, %v5439_v38  ;;  %v3300_v33 = vmax.f32 %v3270_v39, 0.0  ;;  %v126_v38 = vld [vmem:[#allocation2 + $0x328] sm:$0xff] }
0x1252   :  { %v3279_v29 = vpop.f32.mrf.mxu1 }
0x1253   :  { %v3280_v12 = vadd.f32 %v3279_v29, %v5013_v1  ;;  %v3303_v5 = vmax.f32 %v3285_v7, 0.0  ;;  %v3299_v21 = vmax.f32 %v3265_v46, 0.0 }
0x1254   :  { %v4471_v48 = vpop.f32.mrf.mxu1 }
0x1255   :  { %v3295_v32 = vadd.f32 %v4471_v48, %v5438_v61  ;;  %v3302_v31 = vmax.f32 %v3280_v12, 0.0 }
0x1256   :  { %v3289_v16 = vpop.f32.mrf.mxu1 }
0x1257   :  { %v3305_v2 = vmax.f32 %v3295_v32, 0.0  ;;  %v3290_v34 = vadd.f32 %v3289_v16, %v5010_v13  ;;  %v5440_v13 = vld [vmem:[#allocation27_spill] sm:$0xff] }
0x1258   :  { %v3260_v1 = vadd.f32 %v3259_v52, %v5440_v13  ;;  %v125_v13 = vld [vmem:[#allocation2 + $0x320] sm:$0xff] }
0x1259   :  { %v3304_v59 = vmax.f32 %v3290_v34, 0.0  ;;  %4472 = vmatprep.subr.mxu0 %v3305_v2 }
0x125a   :  { %4473 = vmatpush3.msra.mxu0 %v3305_v2  ;;  %v3298_v14 = vmax.f32 %v3260_v1, 0.0 }
0x125b   :  { %4474 = vmatprep.subr.mxu0 %v3304_v59 }
0x125c   :  { %4475 = vmatpush3.msra.mxu0 %v3304_v59 }
0x125d   :  { %4476 = vmatprep.subr.mxu0 %v3303_v5 }
0x125e   :  { %4477 = vmatpush3.msra.mxu0 %v3303_v5 }
0x125f   :  { %4478 = vmatprep.subr.mxu0 %v3302_v31 }
0x1260   :  { %4479 = vmatpush3.msra.mxu0 %v3302_v31  ;;  %v59_v31 = vld [vmem:[#allocation2 + $0x110] sm:$0xff] }
0x1261   :  { %4480 = vmatprep.subr.mxu0 %v3301_v10 }
0x1262   :  { %4481 = vmatpush3.msra.mxu0 %v3301_v10 }
0x1263   :  { %4482 = vmatprep.subr.mxu0 %v3300_v33 }
0x1264   :  { %4483 = vmatpush3.msra.mxu0 %v3300_v33 }
0x1265   :  { %4484 = vmatprep.subr.mxu0 %v3299_v21 }
0x1266   :  { %4485 = vmatpush3.msra.mxu0 %v3299_v21  ;;  %v124_v21 = vld [vmem:[#allocation2 + $0x318] sm:$0xff] }
0x1267   :  { %4486 = vmatprep.subr.mxu0 %v3298_v14 }
0x1268   :  { %4487 = vmatpush3.msra.mxu0 %v3298_v14 }
0x1269   :  { %4489 = vmatmul.mubr.msk.f32.vlgmr.msra.gmra.mxu0 %vm1675_vm6, %v5441_v53  ;;  %4505 = vmatprep.subr.mxu0 %v5414_v3  ;;  %v123_v53 = vld [vmem:[#allocation2 + $0x310] sm:$0xff] }
0x126a   :  { %4491 = vmatprep.mubr.msk.f32.mxu0 %vm1675_vm6, %v5442_v41 }
0x126d   :  { %4492 = vmatmul.mubr.msk.f32.gmra.mxu0 %vm1675_vm6, %v5443_v9  ;;  %v127_v9 = vld [vmem:[#allocation2 + $0x330] sm:$0xff] }
0x126e   :  { %4513 = vmatprep.mubr.msk.f32.mxu0 %vm4658_vm5, %v5414_v3 }
0x1329   :  { %v4490_v42 = vpop.f32.mrf.mxu0 }
0x132a   :  { %v3378_v0 = vadd.f32 %v4490_v42, %v5047_v8  ;;  %v4630_v8 = vld [vmem:[#allocation2 + $0x148] sm:$0x1]  ;;  %v61_v42 = vld [vmem:[#allocation2 + $0x120] sm:$0xff] }
0x132b   :  { %v3372_v36 = vpop.f32.mrf.mxu0 }
0x132c   :  { %v3373_v27 = vadd.f32 %v3372_v36, %v5445_v24  ;;  %v3392_v40 = vadd.f32 %v3378_v0, %v5261_v25 }
0x132d   :  { %v4493_v44 = vpop.f32.mrf.mxu0 }
0x132e   :  { %v3388_v11 = vadd.f32 %v4493_v44, %v5045_v4  ;;  %v3391_v4 = vadd.f32 %v3373_v27, %v5266_v28 }
0x132f   :  { %v3382_v50 = vpop.f32.mrf.mxu0 }
0x1330   :  { %v3394_v55 = vadd.f32 %v3388_v11, %v5250_v45  ;;  %v3383_v23 = vadd.f32 %v3382_v50, %v5444_v43  ;;  %v65_v11 = vld [vmem:[#allocation2 + $0x140] sm:$0xff] }
0x1332   :  { %v3393_v62 = vadd.f32 %v3383_v23, %v5255_v37  ;;  %4495 = vmatpush3.msra.mxu1 %v3394_v55 }
0x1333   :  { %4496 = vmatprep.subr.mxu1 %v5414_v3 }
0x1334   :  { %4497 = vmatpush3.msra.mxu1 %v3393_v62 }
0x1335   :  { %4498 = vmatprep.subr.mxu1 %v5414_v3 }
0x1336   :  { %4499 = vmatpush3.msra.mxu1 %v3392_v40 }
0x1337   :  { %4500 = vmatprep.subr.mxu1 %v5414_v3 }
0x1338   :  { %4501 = vmatpush3.msra.mxu1 %v3391_v4 }
0x1339   :  { %4503 = vmatmul.mubr.msk.f32.vlgmr.msra.gmra.mxu1 %vm238_vm3, %v4630_v8 }
0x133a   :  { %4524 = vmatprep.mubr.msk.f32.mxu1 %vm238_vm3, %v57_v18 }
0x13f9   :  { %v3461_v45 = vpop.f32.mrf.mxu1 }
0x13fa   :  { %v3468_v37 = vrot.slane %v3461_v45, %v4918_v15 }
0x13fb   :  { %v4504_v22 = vpop.f32.mrf.mxu1 }
0x13fc   :  { %v3471_v63 = vsub.f32 %v3393_v62, %v3468_v37  ;;  %v3472_v30 = vsub.f32 %v3394_v55, %v3468_v37  ;;  %v3470_v56 = vsub.f32 %v3392_v40, %v3468_v37  ;;  %v3469_v26 = vsub.f32 %v3391_v4, %v3468_v37 }
0x13fe   :  { %v3476_v25 = vmul.f32 %v3472_v30, %v3472_v30  ;;  %v3475_v47 = vmul.f32 %v3471_v63, %v3471_v63  ;;  %v3474_v28 = vmul.f32 %v3470_v56, %v3470_v56  ;;  %v3473_v52 = vmul.f32 %v3469_v26, %v3469_v26 }
0x1400   :  { %4506 = vmatpush3.msra.mxu0 %v3476_v25 }
0x1401   :  { %4507 = vmatprep.subr.mxu0 %v5414_v3 }
0x1402   :  { %4508 = vmatpush3.msra.mxu0 %v3475_v47 }
0x1403   :  { %4509 = vmatprep.subr.mxu0 %v5414_v3 }
0x1404   :  { %4510 = vmatpush3.msra.mxu0 %v3474_v28 }
0x1405   :  { %4511 = vmatprep.subr.mxu0 %v5414_v3 }
0x1406   :  { %4512 = vmatpush3.msra.mxu0 %v3473_v52 }
0x1407   :  { %4514 = vmatmul.mubr.msk.f32.vlgmr.msra.gmra.mxu0 %vm238_vm3, %v4630_v8  ;;  %4530 = vmatprep.subr.mxu0 %v5414_v3 }
0x1408   :  { %4538 = vmatprep.mubr.msk.f32.mxu0 %vm4658_vm5, %v5414_v3 }
0x14c7   :  { %v3543_v49 = vpop.f32.mrf.mxu0 }
0x14c8   :  { %v3544_v35 = vadd.f32 1e-05, %v3543_v49 }
0x14c9   :  { %v4515_v29 = vpop.f32.mrf.mxu0 }
0x14ca   :  { %4628 = vrsqrt.f32 %v3544_v35 }
0x14d7   :  { %v4629_v48 = vpop.eup %4628 }
0x14d8   :  { %v3551_v61 = vrot.slane %v4629_v48, %v4918_v15 }
0x14da   :  { %v3555_v32 = vmul.f32 %v3551_v61, %v3472_v30  ;;  %v3554_v16 = vmul.f32 %v3551_v61, %v3471_v63  ;;  %v3553_v7 = vmul.f32 %v3551_v61, %v3470_v56  ;;  %v3552_v12 = vmul.f32 %v3551_v61, %v3469_v26 }
0x14dc   :  { %v3559_v2 = vmul.f32 %v3555_v32, %v5075_v57  ;;  %v3558_v34 = vmul.f32 %v3554_v16, %v5077_v19  ;;  %v3557_v51 = vmul.f32 %v3553_v7, %v5081_v54  ;;  %v3556_v39 = vmul.f32 %v3552_v12, %v5087_v60  ;;  %v58_v19 = vld [vmem:[#allocation2 + $0x108] sm:$0xff]  ;;  %v60_v60 = vld [vmem:[#allocation2 + $0x118] sm:$0xff]  ;;  %v63_v54 = vld [vmem:[#allocation2 + $0x130] sm:$0xff] }
0x14de   :  { %v3563_v59 = vadd.f32 %v3559_v2, %v5079_v6  ;;  %v3562_v5 = vadd.f32 %v3558_v34, %v5085_v17  ;;  %v3561_v15 = vadd.f32 %v3557_v51, %v5093_v58  ;;  %v3560_v57 = vadd.f32 %v3556_v39, %v5101_v20  ;;  %v64_v6 = vld [vmem:[#allocation2 + $0x138] sm:$0xff]  ;;  %v62_v17 = vld [vmem:[#allocation2 + $0x128] sm:$0xff] }
0x14e0   :  { %4516 = vmatprep.subr.mxu1 %v3563_v59 }
0x14e1   :  { %4517 = vmatpush3.msra.mxu1 %v3563_v59 }
0x14e2   :  { %4518 = vmatprep.subr.mxu1 %v3562_v5 }
0x14e3   :  { %4519 = vmatpush3.msra.mxu1 %v3562_v5 }
0x14e4   :  { %4520 = vmatprep.subr.mxu1 %v3561_v15 }
0x14e5   :  { %4521 = vmatpush3.msra.mxu1 %v3561_v15 }
0x14e6   :  { %4522 = vmatprep.subr.mxu1 %v3560_v57 }
0x14e7   :  { %4523 = vmatpush3.msra.mxu1 %v3560_v57 }
0x14e8   :  { %4525 = vmatmul.mubr.msk.f32.vlgmr.msra.gmra.mxu1 %vm238_vm3, %v58_v19  ;;  %4541 = vmatprep.subr.mxu1 %v5414_v3 }
0x14e9   :  { %4527 = vmatprep.mubr.msk.f32.mxu1 %vm238_vm3, %v59_v31  ;;  %4542 = vmatpush3.msra.mxu1 %v64_v6 }
0x14ea   :  { %4543 = vmatprep.subr.mxu1 %v5414_v3 }
0x14eb   :  { %4544 = vmatpush3.msra.mxu1 %v63_v54 }
0x14ec   :  { %4528 = vmatmul.mubr.msk.f32.gmra.mxu1 %vm238_vm3, %v60_v60  ;;  %4545 = vmatprep.subr.mxu1 %v5414_v3 }
0x14ed   :  { %4549 = vmatprep.mubr.msk.f32.mxu1 %vm4658_vm5, %v5414_v3  ;;  %4546 = vmatpush3.msra.mxu1 %v62_v17 }
0x14ee   :  { %4547 = vmatprep.subr.mxu1 %v5414_v3 }
0x14ef   :  { %4548 = vmatpush3.msra.mxu1 %v61_v42 }
0x15a8   :  { %v4526_v58 = vpop.f32.mrf.mxu1 }
0x15a9   :  { %v3662_v14 = vmul.f32 %v4526_v58, %v124_v21 }
0x15aa   :  { %v3642_v20 = vpop.f32.mrf.mxu1 }
0x15ab   :  { %v3661_v41 = vmul.f32 %v3642_v20, %v123_v53 }
0x15ac   :  { %v4529_v46 = vpop.f32.mrf.mxu1 }
0x15ad   :  { %v3664_v10 = vmul.f32 %v4529_v46, %v126_v38 }
0x15ae   :  { %v3652_v1 = vpop.f32.mrf.mxu1 }
0x15af   :  { %4531 = vmatpush3.xpose.msk.msra.mxu0 %vm140_vm0, %v3664_v10  ;;  %v3663_v33 = vmul.f32 %v3652_v1, %v125_v13 }
0x15b0   :  { %4532 = vmatprep.subr.mxu0 %v5414_v3 }
0x15b3   :  { %4533 = vmatpush3.xpose.msk.msra.mxu0 %vm140_vm0, %v3663_v33 }
0x15b4   :  { %4534 = vmatprep.subr.mxu0 %v5414_v3 }
0x15b7   :  { %4535 = vmatpush3.xpose.msk.msra.mxu0 %vm140_vm0, %v3662_v14 }
0x15b8   :  { %4536 = vmatprep.subr.mxu0 %v5414_v3 }
0x15bb   :  { %4537 = vmatpush3.xpose.msk.msra.mxu0 %vm140_vm0, %v3661_v41 }
0x15be   :  { %4539 = vmatmul.mubr.msk.f32.vlgmr.msra.gmra.mxu0 %vm140_vm0, %v127_v9 }
0x167e   :  { %v3746_v36 = vpop.f32.mrf.mxu0 }
0x167f   :  { %4550 = vmatmul.mubr.msk.f32.vlgmr.msra.gmra.mxu1 %vm238_vm3, %v3746_v36 }
0x1680   :  { %v4540_v44 = vpop.f32.mrf.mxu0 }
0x173f   :  { %v3819_v50 = vpop.f32.mrf.mxu1 }
0x1740   :  { %v3820_v0 = vadd.f32 %v3819_v50, %v65_v11 }
0x1741   :  { %v4551_v55 = vpop.f32.mrf.mxu1 }
0x1742   :  { %3823 = vst [vmem:[%s5358_s2] sm:$0xff] %v3820_v0 }
0x1743   :  { %3828 = vsyncpa [#allocation3], 1 }

</bundles_post_ra>
